<compile_context>
chip_gen: v7x
topology: tpu7x:2x2x1
jax: 0.10.0
libtpu: 0.0.40
codegen_flags: <defaults>
</compile_context>

<pallas_src>
import functools
import math

import jax
import jax.numpy as jnp
from jax import lax
from jax.experimental import pallas as pl
from jax.experimental.pallas import tpu as pltpu


# ----------------------------------------------------------------------------
# shared math helpers (pure jnp -> usable both inside the kernel and in the ref)
# ----------------------------------------------------------------------------
def _layer_norm(x, gamma, beta, eps=1e-5):
    mu = jnp.mean(x, axis=-1, keepdims=True)
    var = jnp.mean((x - mu) ** 2, axis=-1, keepdims=True)
    return (x - mu) * lax.rsqrt(var + eps) * gamma + beta


def _gelu_exact(x):
    # PyTorch nn.GELU() default = exact erf-based GELU
    return 0.5 * x * (1.0 + lax.erf(x * (1.0 / math.sqrt(2.0))))


def _bf16_round(x):
    # Quantize parameters to bf16-representable values (stored f32) so the f32
    # reference and the bf16-MXU kernel share identical parameter values.
    return x.astype(jnp.bfloat16).astype(jnp.float32)


# ----------------------------------------------------------------------------
# Fused kernel: tokenizer -> n_layers x (MHA -> +res -> LN -> FF -> +res -> LN) -> head
# Processes one block of BB batch elements per grid step.
# ----------------------------------------------------------------------------
def fused_ft_kernel(xn_ref, mask_ref, tokw_ref, tokb_ref, memb_ref,
                    wqkv_ref, bqkv_ref, wo_ref, bo_ref,
                    g1_ref, be1_ref, w1_ref, bf1_ref, w2_ref, bf2_ref,
                    g2_ref, be2_ref, headw_ref, headb_ref, o_ref,
                    *, n_heads, n_layers):
    f32, bf16 = jnp.float32, jnp.bfloat16

    xn = xn_ref[...]                       # (BB, T, 1) f32
    msk = mask_ref[...]                    # (BB, T, 1) f32
    tokw = tokw_ref[...]                   # (T, H) f32
    tokb = tokb_ref[...]                   # (T, H) f32
    memb = memb_ref[...]                   # (1, H) f32

    BB, T, _ = xn.shape
    H = tokw.shape[-1]
    hd = H // n_heads
    M = BB * T
    inv_scale = 1.0 / math.sqrt(hd)

    # ---- feature tokenizer + mask-embedding blend (VPU, f32) ---------------
    tok = xn * tokw[None, :, :] + tokb[None, :, :]            # (BB, T, H)
    x = tok * (1.0 - msk) + memb[None, :, :] * msk            # (BB, T, H)
    x2d = x.reshape(M, H)                                     # rows = (b, t); T is a
                                                              # multiple of 8 here

    # ---- encoder layers (post-residual LN), statically unrolled ------------
    for l in range(n_layers):
        wqkv = wqkv_ref[l]                                    # (H, 3H) bf16
        bqkv = bqkv_ref[l]                                    # (1, 3H) f32
        wo = wo_ref[l]                                        # (H, H)  bf16
        bo = bo_ref[l]                                        # (1, H)  f32
        w1 = w1_ref[l]                                        # (H, P)  bf16
        bf1 = bf1_ref[l]                                      # (1, P)  f32
        w2 = w2_ref[l]                                        # (P, H)  bf16
        bf2 = bf2_ref[l]                                      # (1, H)  f32

        # fused QKV projection on flattened rows (bf16 MXU inputs, f32 acc)
        qkv = jnp.dot(x2d.astype(bf16), wqkv,
                      preferred_element_type=f32) + bqkv      # (M, 3H) f32
        q = (qkv[:, :H] * inv_scale).reshape(BB, T, H).astype(bf16)
        k = qkv[:, H:2 * H].reshape(BB, T, H).astype(bf16)
        v = qkv[:, 2 * H:].reshape(BB, T, H).astype(bf16)

        # multi-head attention, batched over the batch block; each head
        # accumulates directly into the output projection (no lane concat).
        attn = jnp.zeros((M, H), dtype=f32)
        for h in range(n_heads):
            sl = slice(h * hd, (h + 1) * hd)
            qh, kh, vh = q[:, :, sl], k[:, :, sl], v[:, :, sl]    # (BB, T, hd)
            s = jnp.einsum('btd,bsd->bts', qh, kh,
                           preferred_element_type=f32)            # (BB, T, T) f32
            s = s - jnp.max(s, axis=-1, keepdims=True)
            e = jnp.exp(s)
            p = e * pl.reciprocal(jnp.sum(e, axis=-1, keepdims=True), approx=True)
            oh = jnp.einsum('bts,bsd->btd', p.astype(bf16), vh,
                            preferred_element_type=f32)           # (BB, T, hd) f32
            attn = attn + jnp.dot(oh.reshape(M, hd).astype(bf16), wo[sl, :],
                                  preferred_element_type=f32)     # (M, H) f32
        attn = attn + bo

        x2d = _layer_norm(x2d + attn, g1_ref[l], be1_ref[l])      # (M, H) f32

        # feed-forward (exact GELU) on flattened rows
        h1 = jnp.dot(x2d.astype(bf16), w1, preferred_element_type=f32) + bf1
        h1 = _gelu_exact(h1)
        h2 = jnp.dot(h1.astype(bf16), w2, preferred_element_type=f32) + bf2

        x2d = _layer_norm(x2d + h2, g2_ref[l], be2_ref[l])

    # ---- output head: Linear(H, 1) on the MXU -------------------------------
    y = jnp.dot(x2d.astype(bf16), headw_ref[...],
                preferred_element_type=f32) + headb_ref[...]      # (M, 1) f32
    o_ref[...] = y.reshape(BB, T, 1)


# ----------------------------------------------------------------------------
# Wrapper: weight packing + pallas_call
# ----------------------------------------------------------------------------
def pack_params(params):
    """Stack per-layer weights along a layer axis; fuse QKV; bf16 matmul weights."""
    layers = params["layers"]
    bf16 = jnp.bfloat16

    def stack(key, dtype=jnp.float32):
        return jnp.stack([p[key] for p in layers], axis=0).astype(dtype)

    wqkv = jnp.stack(
        [jnp.concatenate([p["wq"], p["wk"], p["wv"]], axis=1) for p in layers],
        axis=0).astype(bf16)                                   # (NL, H, 3H)
    bqkv = jnp.stack(
        [jnp.concatenate([p["bq"], p["bk"], p["bv"]], axis=1) for p in layers],
        axis=0)                                                # (NL, 1, 3H) f32

    return {
        "tok_w": params["tok_w"], "tok_b": params["tok_b"],
        "mask_emb": params["mask_emb"],
        "wqkv": wqkv, "bqkv": bqkv,
        "wo": stack("wo", bf16), "bo": stack("bo"),
        "g1": stack("g1"), "be1": stack("be1"),
        "w1": stack("w1", bf16), "bf1": stack("bf1"),
        "w2": stack("w2", bf16), "bf2": stack("bf2"),
        "g2": stack("g2"), "be2": stack("be2"),
        "head_w": params["head_w"].T.astype(bf16),             # (H, 1)
        "head_b": params["head_b"],                            # (1, 1)
    }


def ft_transformer_forward(x_num, mask, packed, n_heads, block_b=None):
    B, T = x_num.shape
    H = packed["tok_w"].shape[-1]
    P = packed["w1"].shape[-1]
    n_layers = packed["wqkv"].shape[0]

    if block_b is None:
        # aim for ~128 flattened rows (BB*T) per grid step, bounded by B
        block_b = max(1, min(B, max(1, 128 // T)))
        while B % block_b:
            block_b -= 1
    BB = block_b
    grid = (B // BB,)

    xn3 = x_num.reshape(B, T, 1).astype(jnp.float32)
    m3 = mask.reshape(B, T, 1).astype(jnp.float32)

    def batch_spec():
        return pl.BlockSpec((BB, T, 1), lambda b: (b, 0, 0))

    def const_spec(shape):
        n = len(shape)
        return pl.BlockSpec(shape, lambda b, _n=n: (0,) * _n)

    in_specs = [
        batch_spec(), batch_spec(),                       # x_numerical, mask
        const_spec((T, H)), const_spec((T, H)),           # tokenizer W / b
        const_spec((1, H)),                               # mask embedding
        const_spec((n_layers, H, 3 * H)), const_spec((n_layers, 1, 3 * H)),
        const_spec((n_layers, H, H)), const_spec((n_layers, 1, H)),
        const_spec((n_layers, 1, H)), const_spec((n_layers, 1, H)),
        const_spec((n_layers, H, P)), const_spec((n_layers, 1, P)),
        const_spec((n_layers, P, H)), const_spec((n_layers, 1, H)),
        const_spec((n_layers, 1, H)), const_spec((n_layers, 1, H)),
        const_spec((H, 1)), const_spec((1, 1)),
    ]

    out = pl.pallas_call(
        functools.partial(fused_ft_kernel, n_heads=n_heads, n_layers=n_layers),
        grid=grid,
        out_shape=jax.ShapeDtypeStruct((B, T, 1), jnp.float32),
        in_specs=in_specs,
        out_specs=pl.BlockSpec((BB, T, 1), lambda b: (b, 0, 0)),
        compiler_params=pltpu.CompilerParams(
            dimension_semantics=("parallel",)),
    )(xn3, m3, packed["tok_w"], packed["tok_b"], packed["mask_emb"],
      packed["wqkv"], packed["bqkv"], packed["wo"], packed["bo"],
      packed["g1"], packed["be1"], packed["w1"], packed["bf1"],
      packed["w2"], packed["bf2"], packed["g2"], packed["be2"],
      packed["head_w"], packed["head_b"])

    return out.reshape(B, T)


# ----------------------------------------------------------------------------
# Pure-JAX (f32) reference, numerically matching the PyTorch forward
# ----------------------------------------------------------------------------
def reference_forward(x_num, mask, params, n_heads):
    tok = x_num[:, :, None] * params["tok_w"][None] + params["tok_b"][None]
    m = mask[:, :, None]
    x = tok * (1.0 - m) + params["mask_emb"][None] * m
    for p in params["layers"]:
        B, T, H = x.shape
        hd = H // n_heads
        q = x @ p["wq"] + p["bq"]
        k = x @ p["wk"] + p["bk"]
        v = x @ p["wv"] + p["bv"]
        q = q.reshape(B, T, n_heads, hd).transpose(0, 2, 1, 3)
        k = k.reshape(B, T, n_heads, hd).transpose(0, 2, 1, 3)
        v = v.reshape(B, T, n_heads, hd).transpose(0, 2, 1, 3)
        s = (q @ k.transpose(0, 1, 3, 2)) / math.sqrt(hd)
        w = jax.nn.softmax(s, axis=-1)
        a = (w @ v).transpose(0, 2, 1, 3).reshape(B, T, H)
        a = a @ p["wo"] + p["bo"]
        x = _layer_norm(x + a, p["g1"], p["be1"])
        h = x @ p["w1"] + p["bf1"]
        h = _gelu_exact(h)
        h = h @ p["w2"] + p["bf2"]
        x = _layer_norm(x + h, p["g2"], p["be2"])
    y = jnp.einsum("bth,h->bt", x, params["head_w"][0]) + params["head_b"][0, 0]
    return y


# ----------------------------------------------------------------------------
# Deterministic parameter init (synthetic; shapes from the PyTorch __init__)
# ----------------------------------------------------------------------------
def init_params(key, num_cols, hidden_dim, pf_dim, num_layers):
    C, H, P = num_cols, hidden_dim, pf_dim
    keys = jax.random.split(key, 5 + num_layers)

    def rnd(k, shape, scale):
        return (scale * jax.random.normal(k, shape)).astype(jnp.float32)

    params = {
        "tok_w": rnd(keys[0], (C, H), 1.0),            # Linear(1, H) weights per column
        "tok_b": rnd(keys[1], (C, H), 0.1),
        "mask_emb": rnd(keys[2], (1, H), 1.0),         # nn.Parameter(randn(1, H))
        "head_w": _bf16_round(rnd(keys[3], (1, H), 1.0 / math.sqrt(H))),  # Linear(H, 1)
        "head_b": rnd(keys[4], (1, 1), 0.1),
        "layers": [],
    }
    for l in range(num_layers):
        lk = jax.random.split(keys[5 + l], 6)
        sH = 1.0 / math.sqrt(H)
        sP = 1.0 / math.sqrt(P)
        params["layers"].append({
            "wq": _bf16_round(rnd(lk[0], (H, H), sH)), "bq": jnp.zeros((1, H), jnp.float32),
            "wk": _bf16_round(rnd(lk[1], (H, H), sH)), "bk": jnp.zeros((1, H), jnp.float32),
            "wv": _bf16_round(rnd(lk[2], (H, H), sH)), "bv": jnp.zeros((1, H), jnp.float32),
            "wo": _bf16_round(rnd(lk[3], (H, H), sH)), "bo": jnp.zeros((1, H), jnp.float32),
            "g1": jnp.ones((1, H), jnp.float32), "be1": jnp.zeros((1, H), jnp.float32),
            "w1": _bf16_round(rnd(lk[4], (H, P), sH)), "bf1": jnp.zeros((1, P), jnp.float32),
            "w2": _bf16_round(rnd(lk[5], (P, H), sP)), "bf2": jnp.zeros((1, H), jnp.float32),
            "g2": jnp.ones((1, H), jnp.float32), "be2": jnp.zeros((1, H), jnp.float32),
        })
    return params


if __name__ == "__main__":
    # small config: num_numerical_cols=8 (=> seq len 8), hidden=32, pf=64,
    # heads=4, layers=2, batch=2, dropout=0 (inference)
    B, C, H, P, NH, NL = 2, 8, 32, 64, 4, 2

    key = jax.random.PRNGKey(0)
    kx, km, kp = jax.random.split(key, 3)
    x_numerical = jax.random.normal(kx, (B, C), dtype=jnp.float32)
    mask = (jax.random.uniform(km, (B, C)) < 0.3).astype(jnp.float32)
    params = init_params(kp, C, H, P, NL)
    packed = pack_params(params)

    out = ft_transformer_forward(x_numerical, mask, packed, NH)
    out = jax.block_until_ready(out)

    ref = reference_forward(x_numerical, mask, params, NH)
    assert out.shape == (B, C), f"bad output shape {out.shape}"
    assert jnp.all(jnp.isfinite(out)), "non-finite output"
    assert jnp.allclose(out, ref, atol=5e-2, rtol=5e-2), (
        f"mismatch vs reference: max abs diff {jnp.max(jnp.abs(out - ref))}")

    print("KERNEL_OK")
</pallas_src>

<mosaic_0001>
module attributes {stable_mosaic.version = 11 : i64} {
  func.func @fused_ft_kernel(%arg0: i32, %arg1: memref<2x8x1xf32, #tpu.memory_space<vmem>>, %arg2: memref<2x8x1xf32, #tpu.memory_space<vmem>>, %arg3: memref<8x32xf32, #tpu.memory_space<vmem>>, %arg4: memref<8x32xf32, #tpu.memory_space<vmem>>, %arg5: memref<1x32xf32, #tpu.memory_space<vmem>>, %arg6: memref<2x32x96xbf16, #tpu.memory_space<vmem>>, %arg7: memref<2x1x96xf32, #tpu.memory_space<vmem>>, %arg8: memref<2x32x32xbf16, #tpu.memory_space<vmem>>, %arg9: memref<2x1x32xf32, #tpu.memory_space<vmem>>, %arg10: memref<2x1x32xf32, #tpu.memory_space<vmem>>, %arg11: memref<2x1x32xf32, #tpu.memory_space<vmem>>, %arg12: memref<2x32x64xbf16, #tpu.memory_space<vmem>>, %arg13: memref<2x1x64xf32, #tpu.memory_space<vmem>>, %arg14: memref<2x64x32xbf16, #tpu.memory_space<vmem>>, %arg15: memref<2x1x32xf32, #tpu.memory_space<vmem>>, %arg16: memref<2x1x32xf32, #tpu.memory_space<vmem>>, %arg17: memref<2x1x32xf32, #tpu.memory_space<vmem>>, %arg18: memref<32x1xbf16, #tpu.memory_space<vmem>>, %arg19: memref<1x1xf32, #tpu.memory_space<vmem>>, %arg20: memref<2x8x1xf32, #tpu.memory_space<vmem>>) attributes {dimension_semantics = [#tpu.dimension_semantics<parallel>], iteration_bounds = array<i64: 1>, scalar_prefetch = 0 : i64, scratch_operands = 0 : i64, tpu.core_type = #tpu.core_type<tc>, window_params = [{transform_indices = @transform_0, window_bounds = array<i64: 2, 8, 1>}, {transform_indices = @transform_1, window_bounds = array<i64: 2, 8, 1>}, {pipeline_mode = #tpu.pipeline_mode<synchronous>, transform_indices = @transform_2, window_bounds = array<i64: 8, 32>}, {pipeline_mode = #tpu.pipeline_mode<synchronous>, transform_indices = @transform_3, window_bounds = array<i64: 8, 32>}, {pipeline_mode = #tpu.pipeline_mode<synchronous>, transform_indices = @transform_4, window_bounds = array<i64: 1, 32>}, {pipeline_mode = #tpu.pipeline_mode<synchronous>, transform_indices = @transform_5, window_bounds = array<i64: 2, 32, 96>}, {pipeline_mode = #tpu.pipeline_mode<synchronous>, transform_indices = @transform_6, window_bounds = array<i64: 2, 1, 96>}, {pipeline_mode = #tpu.pipeline_mode<synchronous>, transform_indices = @transform_7, window_bounds = array<i64: 2, 32, 32>}, {pipeline_mode = #tpu.pipeline_mode<synchronous>, transform_indices = @transform_8, window_bounds = array<i64: 2, 1, 32>}, {pipeline_mode = #tpu.pipeline_mode<synchronous>, transform_indices = @transform_9, window_bounds = array<i64: 2, 1, 32>}, {pipeline_mode = #tpu.pipeline_mode<synchronous>, transform_indices = @transform_10, window_bounds = array<i64: 2, 1, 32>}, {pipeline_mode = #tpu.pipeline_mode<synchronous>, transform_indices = @transform_11, window_bounds = array<i64: 2, 32, 64>}, {pipeline_mode = #tpu.pipeline_mode<synchronous>, transform_indices = @transform_12, window_bounds = array<i64: 2, 1, 64>}, {pipeline_mode = #tpu.pipeline_mode<synchronous>, transform_indices = @transform_13, window_bounds = array<i64: 2, 64, 32>}, {pipeline_mode = #tpu.pipeline_mode<synchronous>, transform_indices = @transform_14, window_bounds = array<i64: 2, 1, 32>}, {pipeline_mode = #tpu.pipeline_mode<synchronous>, transform_indices = @transform_15, window_bounds = array<i64: 2, 1, 32>}, {pipeline_mode = #tpu.pipeline_mode<synchronous>, transform_indices = @transform_16, window_bounds = array<i64: 2, 1, 32>}, {pipeline_mode = #tpu.pipeline_mode<synchronous>, transform_indices = @transform_17, window_bounds = array<i64: 32, 1>}, {pipeline_mode = #tpu.pipeline_mode<synchronous>, transform_indices = @transform_18, window_bounds = array<i64: 1, 1>}, {transform_indices = @transform_19, window_bounds = array<i64: 2, 8, 1>}]} {
    %c0 = arith.constant 0 : index
    %c0_0 = arith.constant 0 : index
    %c0_1 = arith.constant 0 : index
    %0 = vector.load %arg1[%c0, %c0_0, %c0_1] : memref<2x8x1xf32, #tpu.memory_space<vmem>>, vector<2x8x1xf32>
    %c0_2 = arith.constant 0 : index
    %c0_3 = arith.constant 0 : index
    %c0_4 = arith.constant 0 : index
    %1 = vector.load %arg2[%c0_2, %c0_3, %c0_4] : memref<2x8x1xf32, #tpu.memory_space<vmem>>, vector<2x8x1xf32>
    %c0_5 = arith.constant 0 : index
    %c0_6 = arith.constant 0 : index
    %2 = vector.load %arg3[%c0_5, %c0_6] : memref<8x32xf32, #tpu.memory_space<vmem>>, vector<8x32xf32>
    %c0_7 = arith.constant 0 : index
    %c0_8 = arith.constant 0 : index
    %3 = vector.load %arg4[%c0_7, %c0_8] : memref<8x32xf32, #tpu.memory_space<vmem>>, vector<8x32xf32>
    %c0_9 = arith.constant 0 : index
    %c0_10 = arith.constant 0 : index
    %4 = vector.load %arg5[%c0_9, %c0_10] : memref<1x32xf32, #tpu.memory_space<vmem>>, vector<1x32xf32>
    %5 = vector.shape_cast %2 : vector<8x32xf32> to vector<1x8x32xf32>
    %6 = vector.broadcast %0 : vector<2x8x1xf32> to vector<2x8x32xf32>
    %7 = vector.broadcast %5 : vector<1x8x32xf32> to vector<2x8x32xf32>
    %8 = arith.mulf %6, %7 : vector<2x8x32xf32>
    %9 = vector.shape_cast %3 : vector<8x32xf32> to vector<1x8x32xf32>
    %10 = vector.broadcast %9 : vector<1x8x32xf32> to vector<2x8x32xf32>
    %11 = arith.addf %8, %10 : vector<2x8x32xf32>
    %cst = arith.constant 1.000000e+00 : f32
    %12 = vector.broadcast %cst : f32 to vector<2x8x1xf32>
    %13 = arith.subf %12, %1 : vector<2x8x1xf32>
    %14 = vector.broadcast %13 : vector<2x8x1xf32> to vector<2x8x32xf32>
    %15 = arith.mulf %11, %14 : vector<2x8x32xf32>
    %16 = vector.shape_cast %4 : vector<1x32xf32> to vector<1x1x32xf32>
    %17 = vector.broadcast %16 : vector<1x1x32xf32> to vector<2x8x32xf32>
    %18 = vector.broadcast %1 : vector<2x8x1xf32> to vector<2x8x32xf32>
    %19 = arith.mulf %17, %18 : vector<2x8x32xf32>
    %20 = arith.addf %15, %19 : vector<2x8x32xf32>
    %21 = vector.shape_cast %20 : vector<2x8x32xf32> to vector<16x32xf32>
    %c0_11 = arith.constant 0 : index
    %c0_12 = arith.constant 0 : index
    %c0_13 = arith.constant 0 : index
    %22 = vector.load %arg6[%c0_11, %c0_12, %c0_13] : memref<2x32x96xbf16, #tpu.memory_space<vmem>>, vector<1x32x96xbf16>
    %23 = vector.shape_cast %22 : vector<1x32x96xbf16> to vector<32x96xbf16>
    %c0_14 = arith.constant 0 : index
    %c0_15 = arith.constant 0 : index
    %c0_16 = arith.constant 0 : index
    %24 = vector.load %arg7[%c0_14, %c0_15, %c0_16] : memref<2x1x96xf32, #tpu.memory_space<vmem>>, vector<1x1x96xf32>
    %25 = vector.shape_cast %24 : vector<1x1x96xf32> to vector<1x96xf32>
    %c0_17 = arith.constant 0 : index
    %c0_18 = arith.constant 0 : index
    %c0_19 = arith.constant 0 : index
    %26 = vector.load %arg8[%c0_17, %c0_18, %c0_19] : memref<2x32x32xbf16, #tpu.memory_space<vmem>>, vector<1x32x32xbf16>
    %27 = vector.shape_cast %26 : vector<1x32x32xbf16> to vector<32x32xbf16>
    %c0_20 = arith.constant 0 : index
    %c0_21 = arith.constant 0 : index
    %c0_22 = arith.constant 0 : index
    %28 = vector.load %arg9[%c0_20, %c0_21, %c0_22] : memref<2x1x32xf32, #tpu.memory_space<vmem>>, vector<1x1x32xf32>
    %29 = vector.shape_cast %28 : vector<1x1x32xf32> to vector<1x32xf32>
    %c0_23 = arith.constant 0 : index
    %c0_24 = arith.constant 0 : index
    %c0_25 = arith.constant 0 : index
    %30 = vector.load %arg12[%c0_23, %c0_24, %c0_25] : memref<2x32x64xbf16, #tpu.memory_space<vmem>>, vector<1x32x64xbf16>
    %31 = vector.shape_cast %30 : vector<1x32x64xbf16> to vector<32x64xbf16>
    %c0_26 = arith.constant 0 : index
    %c0_27 = arith.constant 0 : index
    %c0_28 = arith.constant 0 : index
    %32 = vector.load %arg13[%c0_26, %c0_27, %c0_28] : memref<2x1x64xf32, #tpu.memory_space<vmem>>, vector<1x1x64xf32>
    %33 = vector.shape_cast %32 : vector<1x1x64xf32> to vector<1x64xf32>
    %c0_29 = arith.constant 0 : index
    %c0_30 = arith.constant 0 : index
    %c0_31 = arith.constant 0 : index
    %34 = vector.load %arg14[%c0_29, %c0_30, %c0_31] : memref<2x64x32xbf16, #tpu.memory_space<vmem>>, vector<1x64x32xbf16>
    %35 = vector.shape_cast %34 : vector<1x64x32xbf16> to vector<64x32xbf16>
    %c0_32 = arith.constant 0 : index
    %c0_33 = arith.constant 0 : index
    %c0_34 = arith.constant 0 : index
    %36 = vector.load %arg15[%c0_32, %c0_33, %c0_34] : memref<2x1x32xf32, #tpu.memory_space<vmem>>, vector<1x1x32xf32>
    %37 = vector.shape_cast %36 : vector<1x1x32xf32> to vector<1x32xf32>
    %38 = arith.truncf %21 : vector<16x32xf32> to vector<16x32xbf16>
    %cst_35 = arith.constant dense<0.000000e+00> : vector<16x96xf32>
    %39 = tpu.matmul %38, %23, %cst_35 {dimension_numbers = #tpu.dot_dimension_numbers<[1], [0], [0], [1], [0, 0, 1, 1], [], []>} : vector<16x32xbf16>, vector<32x96xbf16>, vector<16x96xf32> -> vector<16x96xf32>
    %40 = vector.broadcast %25 : vector<1x96xf32> to vector<16x96xf32>
    %41 = arith.addf %39, %40 : vector<16x96xf32>
    %42 = vector.extract_strided_slice %41 {offsets = [0, 0], sizes = [16, 32], strides = [1, 1]} : vector<16x96xf32> to vector<16x32xf32>
    %cst_36 = arith.constant 0.353553385 : f32
    %43 = vector.broadcast %cst_36 : f32 to vector<16x32xf32>
    %44 = arith.mulf %42, %43 : vector<16x32xf32>
    %45 = vector.shape_cast %44 : vector<16x32xf32> to vector<2x8x32xf32>
    %46 = arith.truncf %45 : vector<2x8x32xf32> to vector<2x8x32xbf16>
    %47 = vector.extract_strided_slice %41 {offsets = [0, 32], sizes = [16, 32], strides = [1, 1]} : vector<16x96xf32> to vector<16x32xf32>
    %48 = vector.shape_cast %47 : vector<16x32xf32> to vector<2x8x32xf32>
    %49 = arith.truncf %48 : vector<2x8x32xf32> to vector<2x8x32xbf16>
    %50 = vector.extract_strided_slice %41 {offsets = [0, 64], sizes = [16, 32], strides = [1, 1]} : vector<16x96xf32> to vector<16x32xf32>
    %51 = vector.shape_cast %50 : vector<16x32xf32> to vector<2x8x32xf32>
    %52 = arith.truncf %51 : vector<2x8x32xf32> to vector<2x8x32xbf16>
    %cst_37 = arith.constant 0.000000e+00 : f32
    %53 = vector.broadcast %cst_37 : f32 to vector<16x32xf32>
    %54 = vector.extract_strided_slice %46 {offsets = [0, 0, 0], sizes = [2, 8, 8], strides = [1, 1, 1]} : vector<2x8x32xbf16> to vector<2x8x8xbf16>
    %55 = vector.extract_strided_slice %49 {offsets = [0, 0, 0], sizes = [2, 8, 8], strides = [1, 1, 1]} : vector<2x8x32xbf16> to vector<2x8x8xbf16>
    %56 = vector.extract_strided_slice %52 {offsets = [0, 0, 0], sizes = [2, 8, 8], strides = [1, 1, 1]} : vector<2x8x32xbf16> to vector<2x8x8xbf16>
    "tpu.trace_start"() <{level = 10 : i32, message = "btd,bsd->bts"}> : () -> ()
    %cst_38 = arith.constant dense<0.000000e+00> : vector<2x8x8xf32>
    %57 = tpu.matmul %54, %55, %cst_38 {dimension_numbers = #tpu.dot_dimension_numbers<[2], [2], [1], [1], [0, 0, 0, 1, 1, 1], [0], [0]>} : vector<2x8x8xbf16>, vector<2x8x8xbf16>, vector<2x8x8xf32> -> vector<2x8x8xf32>
    "tpu.trace_stop"() : () -> ()
    %cst_39 = arith.constant dense<0xFF800000> : vector<2x8xf32>
    %58 = vector.multi_reduction <maximumf>, %57, %cst_39 [2] : vector<2x8x8xf32> to vector<2x8xf32>
    %59 = vector.shape_cast %58 : vector<2x8xf32> to vector<2x8x1xf32>
    %60 = vector.broadcast %59 : vector<2x8x1xf32> to vector<2x8x8xf32>
    %61 = arith.subf %57, %60 : vector<2x8x8xf32>
    %62 = math.exp %61 : vector<2x8x8xf32>
    %cst_40 = arith.constant dense<0.000000e+00> : vector<2x8xf32>
    %63 = vector.multi_reduction <add>, %62, %cst_40 [2] : vector<2x8x8xf32> to vector<2x8xf32>
    %64 = vector.shape_cast %63 : vector<2x8xf32> to vector<2x8x1xf32>
    %65 = tpu.reciprocal %64 {approx = true} : vector<2x8x1xf32> -> vector<2x8x1xf32>
    %66 = vector.broadcast %65 : vector<2x8x1xf32> to vector<2x8x8xf32>
    %67 = arith.mulf %62, %66 : vector<2x8x8xf32>
    %68 = arith.truncf %67 : vector<2x8x8xf32> to vector<2x8x8xbf16>
    "tpu.trace_start"() <{level = 10 : i32, message = "bts,bsd->btd"}> : () -> ()
    %cst_41 = arith.constant dense<0.000000e+00> : vector<2x8x8xf32>
    %69 = tpu.matmul %68, %56, %cst_41 {dimension_numbers = #tpu.dot_dimension_numbers<[2], [1], [1], [2], [0, 0, 0, 1, 1, 2], [0], [0]>} : vector<2x8x8xbf16>, vector<2x8x8xbf16>, vector<2x8x8xf32> -> vector<2x8x8xf32>
    "tpu.trace_stop"() : () -> ()
    %70 = vector.shape_cast %69 : vector<2x8x8xf32> to vector<16x8xf32>
    %71 = arith.truncf %70 : vector<16x8xf32> to vector<16x8xbf16>
    %72 = vector.extract_strided_slice %27 {offsets = [0, 0], sizes = [8, 32], strides = [1, 1]} : vector<32x32xbf16> to vector<8x32xbf16>
    %cst_42 = arith.constant dense<0.000000e+00> : vector<16x32xf32>
    %73 = tpu.matmul %71, %72, %cst_42 {dimension_numbers = #tpu.dot_dimension_numbers<[1], [0], [0], [1], [0, 0, 1, 1], [], []>} : vector<16x8xbf16>, vector<8x32xbf16>, vector<16x32xf32> -> vector<16x32xf32>
    %74 = arith.addf %53, %73 : vector<16x32xf32>
    %75 = vector.extract_strided_slice %46 {offsets = [0, 0, 8], sizes = [2, 8, 8], strides = [1, 1, 1]} : vector<2x8x32xbf16> to vector<2x8x8xbf16>
    %76 = vector.extract_strided_slice %49 {offsets = [0, 0, 8], sizes = [2, 8, 8], strides = [1, 1, 1]} : vector<2x8x32xbf16> to vector<2x8x8xbf16>
    %77 = vector.extract_strided_slice %52 {offsets = [0, 0, 8], sizes = [2, 8, 8], strides = [1, 1, 1]} : vector<2x8x32xbf16> to vector<2x8x8xbf16>
    "tpu.trace_start"() <{level = 10 : i32, message = "btd,bsd->bts"}> : () -> ()
    %cst_43 = arith.constant dense<0.000000e+00> : vector<2x8x8xf32>
    %78 = tpu.matmul %75, %76, %cst_43 {dimension_numbers = #tpu.dot_dimension_numbers<[2], [2], [1], [1], [0, 0, 0, 1, 1, 1], [0], [0]>} : vector<2x8x8xbf16>, vector<2x8x8xbf16>, vector<2x8x8xf32> -> vector<2x8x8xf32>
    "tpu.trace_stop"() : () -> ()
    %cst_44 = arith.constant dense<0xFF800000> : vector<2x8xf32>
    %79 = vector.multi_reduction <maximumf>, %78, %cst_44 [2] : vector<2x8x8xf32> to vector<2x8xf32>
    %80 = vector.shape_cast %79 : vector<2x8xf32> to vector<2x8x1xf32>
    %81 = vector.broadcast %80 : vector<2x8x1xf32> to vector<2x8x8xf32>
    %82 = arith.subf %78, %81 : vector<2x8x8xf32>
    %83 = math.exp %82 : vector<2x8x8xf32>
    %cst_45 = arith.constant dense<0.000000e+00> : vector<2x8xf32>
    %84 = vector.multi_reduction <add>, %83, %cst_45 [2] : vector<2x8x8xf32> to vector<2x8xf32>
    %85 = vector.shape_cast %84 : vector<2x8xf32> to vector<2x8x1xf32>
    %86 = tpu.reciprocal %85 {approx = true} : vector<2x8x1xf32> -> vector<2x8x1xf32>
    %87 = vector.broadcast %86 : vector<2x8x1xf32> to vector<2x8x8xf32>
    %88 = arith.mulf %83, %87 : vector<2x8x8xf32>
    %89 = arith.truncf %88 : vector<2x8x8xf32> to vector<2x8x8xbf16>
    "tpu.trace_start"() <{level = 10 : i32, message = "bts,bsd->btd"}> : () -> ()
    %cst_46 = arith.constant dense<0.000000e+00> : vector<2x8x8xf32>
    %90 = tpu.matmul %89, %77, %cst_46 {dimension_numbers = #tpu.dot_dimension_numbers<[2], [1], [1], [2], [0, 0, 0, 1, 1, 2], [0], [0]>} : vector<2x8x8xbf16>, vector<2x8x8xbf16>, vector<2x8x8xf32> -> vector<2x8x8xf32>
    "tpu.trace_stop"() : () -> ()
    %91 = vector.shape_cast %90 : vector<2x8x8xf32> to vector<16x8xf32>
    %92 = arith.truncf %91 : vector<16x8xf32> to vector<16x8xbf16>
    %93 = vector.extract_strided_slice %27 {offsets = [8, 0], sizes = [8, 32], strides = [1, 1]} : vector<32x32xbf16> to vector<8x32xbf16>
    %cst_47 = arith.constant dense<0.000000e+00> : vector<16x32xf32>
    %94 = tpu.matmul %92, %93, %cst_47 {dimension_numbers = #tpu.dot_dimension_numbers<[1], [0], [0], [1], [0, 0, 1, 1], [], []>} : vector<16x8xbf16>, vector<8x32xbf16>, vector<16x32xf32> -> vector<16x32xf32>
    %95 = arith.addf %74, %94 : vector<16x32xf32>
    %96 = vector.extract_strided_slice %46 {offsets = [0, 0, 16], sizes = [2, 8, 8], strides = [1, 1, 1]} : vector<2x8x32xbf16> to vector<2x8x8xbf16>
    %97 = vector.extract_strided_slice %49 {offsets = [0, 0, 16], sizes = [2, 8, 8], strides = [1, 1, 1]} : vector<2x8x32xbf16> to vector<2x8x8xbf16>
    %98 = vector.extract_strided_slice %52 {offsets = [0, 0, 16], sizes = [2, 8, 8], strides = [1, 1, 1]} : vector<2x8x32xbf16> to vector<2x8x8xbf16>
    "tpu.trace_start"() <{level = 10 : i32, message = "btd,bsd->bts"}> : () -> ()
    %cst_48 = arith.constant dense<0.000000e+00> : vector<2x8x8xf32>
    %99 = tpu.matmul %96, %97, %cst_48 {dimension_numbers = #tpu.dot_dimension_numbers<[2], [2], [1], [1], [0, 0, 0, 1, 1, 1], [0], [0]>} : vector<2x8x8xbf16>, vector<2x8x8xbf16>, vector<2x8x8xf32> -> vector<2x8x8xf32>
    "tpu.trace_stop"() : () -> ()
    %cst_49 = arith.constant dense<0xFF800000> : vector<2x8xf32>
    %100 = vector.multi_reduction <maximumf>, %99, %cst_49 [2] : vector<2x8x8xf32> to vector<2x8xf32>
    %101 = vector.shape_cast %100 : vector<2x8xf32> to vector<2x8x1xf32>
    %102 = vector.broadcast %101 : vector<2x8x1xf32> to vector<2x8x8xf32>
    %103 = arith.subf %99, %102 : vector<2x8x8xf32>
    %104 = math.exp %103 : vector<2x8x8xf32>
    %cst_50 = arith.constant dense<0.000000e+00> : vector<2x8xf32>
    %105 = vector.multi_reduction <add>, %104, %cst_50 [2] : vector<2x8x8xf32> to vector<2x8xf32>
    %106 = vector.shape_cast %105 : vector<2x8xf32> to vector<2x8x1xf32>
    %107 = tpu.reciprocal %106 {approx = true} : vector<2x8x1xf32> -> vector<2x8x1xf32>
    %108 = vector.broadcast %107 : vector<2x8x1xf32> to vector<2x8x8xf32>
    %109 = arith.mulf %104, %108 : vector<2x8x8xf32>
    %110 = arith.truncf %109 : vector<2x8x8xf32> to vector<2x8x8xbf16>
    "tpu.trace_start"() <{level = 10 : i32, message = "bts,bsd->btd"}> : () -> ()
    %cst_51 = arith.constant dense<0.000000e+00> : vector<2x8x8xf32>
    %111 = tpu.matmul %110, %98, %cst_51 {dimension_numbers = #tpu.dot_dimension_numbers<[2], [1], [1], [2], [0, 0, 0, 1, 1, 2], [0], [0]>} : vector<2x8x8xbf16>, vector<2x8x8xbf16>, vector<2x8x8xf32> -> vector<2x8x8xf32>
    "tpu.trace_stop"() : () -> ()
    %112 = vector.shape_cast %111 : vector<2x8x8xf32> to vector<16x8xf32>
    %113 = arith.truncf %112 : vector<16x8xf32> to vector<16x8xbf16>
    %114 = vector.extract_strided_slice %27 {offsets = [16, 0], sizes = [8, 32], strides = [1, 1]} : vector<32x32xbf16> to vector<8x32xbf16>
    %cst_52 = arith.constant dense<0.000000e+00> : vector<16x32xf32>
    %115 = tpu.matmul %113, %114, %cst_52 {dimension_numbers = #tpu.dot_dimension_numbers<[1], [0], [0], [1], [0, 0, 1, 1], [], []>} : vector<16x8xbf16>, vector<8x32xbf16>, vector<16x32xf32> -> vector<16x32xf32>
    %116 = arith.addf %95, %115 : vector<16x32xf32>
    %117 = vector.extract_strided_slice %46 {offsets = [0, 0, 24], sizes = [2, 8, 8], strides = [1, 1, 1]} : vector<2x8x32xbf16> to vector<2x8x8xbf16>
    %118 = vector.extract_strided_slice %49 {offsets = [0, 0, 24], sizes = [2, 8, 8], strides = [1, 1, 1]} : vector<2x8x32xbf16> to vector<2x8x8xbf16>
    %119 = vector.extract_strided_slice %52 {offsets = [0, 0, 24], sizes = [2, 8, 8], strides = [1, 1, 1]} : vector<2x8x32xbf16> to vector<2x8x8xbf16>
    "tpu.trace_start"() <{level = 10 : i32, message = "btd,bsd->bts"}> : () -> ()
    %cst_53 = arith.constant dense<0.000000e+00> : vector<2x8x8xf32>
    %120 = tpu.matmul %117, %118, %cst_53 {dimension_numbers = #tpu.dot_dimension_numbers<[2], [2], [1], [1], [0, 0, 0, 1, 1, 1], [0], [0]>} : vector<2x8x8xbf16>, vector<2x8x8xbf16>, vector<2x8x8xf32> -> vector<2x8x8xf32>
    "tpu.trace_stop"() : () -> ()
    %cst_54 = arith.constant dense<0xFF800000> : vector<2x8xf32>
    %121 = vector.multi_reduction <maximumf>, %120, %cst_54 [2] : vector<2x8x8xf32> to vector<2x8xf32>
    %122 = vector.shape_cast %121 : vector<2x8xf32> to vector<2x8x1xf32>
    %123 = vector.broadcast %122 : vector<2x8x1xf32> to vector<2x8x8xf32>
    %124 = arith.subf %120, %123 : vector<2x8x8xf32>
    %125 = math.exp %124 : vector<2x8x8xf32>
    %cst_55 = arith.constant dense<0.000000e+00> : vector<2x8xf32>
    %126 = vector.multi_reduction <add>, %125, %cst_55 [2] : vector<2x8x8xf32> to vector<2x8xf32>
    %127 = vector.shape_cast %126 : vector<2x8xf32> to vector<2x8x1xf32>
    %128 = tpu.reciprocal %127 {approx = true} : vector<2x8x1xf32> -> vector<2x8x1xf32>
    %129 = vector.broadcast %128 : vector<2x8x1xf32> to vector<2x8x8xf32>
    %130 = arith.mulf %125, %129 : vector<2x8x8xf32>
    %131 = arith.truncf %130 : vector<2x8x8xf32> to vector<2x8x8xbf16>
    "tpu.trace_start"() <{level = 10 : i32, message = "bts,bsd->btd"}> : () -> ()
    %cst_56 = arith.constant dense<0.000000e+00> : vector<2x8x8xf32>
    %132 = tpu.matmul %131, %119, %cst_56 {dimension_numbers = #tpu.dot_dimension_numbers<[2], [1], [1], [2], [0, 0, 0, 1, 1, 2], [0], [0]>} : vector<2x8x8xbf16>, vector<2x8x8xbf16>, vector<2x8x8xf32> -> vector<2x8x8xf32>
    "tpu.trace_stop"() : () -> ()
    %133 = vector.shape_cast %132 : vector<2x8x8xf32> to vector<16x8xf32>
    %134 = arith.truncf %133 : vector<16x8xf32> to vector<16x8xbf16>
    %135 = vector.extract_strided_slice %27 {offsets = [24, 0], sizes = [8, 32], strides = [1, 1]} : vector<32x32xbf16> to vector<8x32xbf16>
    %cst_57 = arith.constant dense<0.000000e+00> : vector<16x32xf32>
    %136 = tpu.matmul %134, %135, %cst_57 {dimension_numbers = #tpu.dot_dimension_numbers<[1], [0], [0], [1], [0, 0, 1, 1], [], []>} : vector<16x8xbf16>, vector<8x32xbf16>, vector<16x32xf32> -> vector<16x32xf32>
    %137 = arith.addf %116, %136 : vector<16x32xf32>
    %138 = vector.broadcast %29 : vector<1x32xf32> to vector<16x32xf32>
    %139 = arith.addf %137, %138 : vector<16x32xf32>
    %140 = arith.addf %21, %139 : vector<16x32xf32>
    %c0_58 = arith.constant 0 : index
    %c0_59 = arith.constant 0 : index
    %c0_60 = arith.constant 0 : index
    %141 = vector.load %arg10[%c0_58, %c0_59, %c0_60] : memref<2x1x32xf32, #tpu.memory_space<vmem>>, vector<1x1x32xf32>
    %142 = vector.shape_cast %141 : vector<1x1x32xf32> to vector<1x32xf32>
    %c0_61 = arith.constant 0 : index
    %c0_62 = arith.constant 0 : index
    %c0_63 = arith.constant 0 : index
    %143 = vector.load %arg11[%c0_61, %c0_62, %c0_63] : memref<2x1x32xf32, #tpu.memory_space<vmem>>, vector<1x1x32xf32>
    %144 = vector.shape_cast %143 : vector<1x1x32xf32> to vector<1x32xf32>
    %cst_64 = arith.constant dense<0.000000e+00> : vector<16xf32>
    %145 = vector.multi_reduction <add>, %140, %cst_64 [1] : vector<16x32xf32> to vector<16xf32>
    %146 = vector.shape_cast %145 : vector<16xf32> to vector<16x1xf32>
    %cst_65 = arith.constant 3.200000e+01 : f32
    %147 = vector.broadcast %cst_65 : f32 to vector<16x1xf32>
    %148 = arith.divf %146, %147 : vector<16x1xf32>
    %149 = vector.broadcast %148 : vector<16x1xf32> to vector<16x32xf32>
    %150 = arith.subf %140, %149 : vector<16x32xf32>
    %151 = arith.mulf %150, %150 : vector<16x32xf32>
    %cst_66 = arith.constant dense<0.000000e+00> : vector<16xf32>
    %152 = vector.multi_reduction <add>, %151, %cst_66 [1] : vector<16x32xf32> to vector<16xf32>
    %153 = vector.shape_cast %152 : vector<16xf32> to vector<16x1xf32>
    %cst_67 = arith.constant 3.200000e+01 : f32
    %154 = vector.broadcast %cst_67 : f32 to vector<16x1xf32>
    %155 = arith.divf %153, %154 : vector<16x1xf32>
    %156 = vector.broadcast %148 : vector<16x1xf32> to vector<16x32xf32>
    %157 = arith.subf %140, %156 : vector<16x32xf32>
    %cst_68 = arith.constant 9.99999974E-6 : f32
    %158 = vector.broadcast %cst_68 : f32 to vector<16x1xf32>
    %159 = arith.addf %155, %158 : vector<16x1xf32>
    %160 = math.rsqrt %159 : vector<16x1xf32>
    %161 = vector.broadcast %160 : vector<16x1xf32> to vector<16x32xf32>
    %162 = arith.mulf %157, %161 : vector<16x32xf32>
    %163 = vector.broadcast %142 : vector<1x32xf32> to vector<16x32xf32>
    %164 = arith.mulf %162, %163 : vector<16x32xf32>
    %165 = vector.broadcast %144 : vector<1x32xf32> to vector<16x32xf32>
    %166 = arith.addf %164, %165 : vector<16x32xf32>
    %167 = arith.truncf %166 : vector<16x32xf32> to vector<16x32xbf16>
    %cst_69 = arith.constant dense<0.000000e+00> : vector<16x64xf32>
    %168 = tpu.matmul %167, %31, %cst_69 {dimension_numbers = #tpu.dot_dimension_numbers<[1], [0], [0], [1], [0, 0, 1, 1], [], []>} : vector<16x32xbf16>, vector<32x64xbf16>, vector<16x64xf32> -> vector<16x64xf32>
    %169 = vector.broadcast %33 : vector<1x64xf32> to vector<16x64xf32>
    %170 = arith.addf %168, %169 : vector<16x64xf32>
    %cst_70 = arith.constant 5.000000e-01 : f32
    %171 = vector.broadcast %cst_70 : f32 to vector<16x64xf32>
    %172 = arith.mulf %171, %170 : vector<16x64xf32>
    %cst_71 = arith.constant 0.707106769 : f32
    %173 = vector.broadcast %cst_71 : f32 to vector<16x64xf32>
    %174 = arith.mulf %170, %173 : vector<16x64xf32>
    %175 = math.erf %174 : vector<16x64xf32>
    %cst_72 = arith.constant 1.000000e+00 : f32
    %176 = vector.broadcast %cst_72 : f32 to vector<16x64xf32>
    %177 = arith.addf %176, %175 : vector<16x64xf32>
    %178 = arith.mulf %172, %177 : vector<16x64xf32>
    %179 = arith.truncf %178 : vector<16x64xf32> to vector<16x64xbf16>
    %cst_73 = arith.constant dense<0.000000e+00> : vector<16x32xf32>
    %180 = tpu.matmul %179, %35, %cst_73 {dimension_numbers = #tpu.dot_dimension_numbers<[1], [0], [0], [1], [0, 0, 1, 1], [], []>} : vector<16x64xbf16>, vector<64x32xbf16>, vector<16x32xf32> -> vector<16x32xf32>
    %181 = vector.broadcast %37 : vector<1x32xf32> to vector<16x32xf32>
    %182 = arith.addf %180, %181 : vector<16x32xf32>
    %183 = arith.addf %166, %182 : vector<16x32xf32>
    %c0_74 = arith.constant 0 : index
    %c0_75 = arith.constant 0 : index
    %c0_76 = arith.constant 0 : index
    %184 = vector.load %arg16[%c0_74, %c0_75, %c0_76] : memref<2x1x32xf32, #tpu.memory_space<vmem>>, vector<1x1x32xf32>
    %185 = vector.shape_cast %184 : vector<1x1x32xf32> to vector<1x32xf32>
    %c0_77 = arith.constant 0 : index
    %c0_78 = arith.constant 0 : index
    %c0_79 = arith.constant 0 : index
    %186 = vector.load %arg17[%c0_77, %c0_78, %c0_79] : memref<2x1x32xf32, #tpu.memory_space<vmem>>, vector<1x1x32xf32>
    %187 = vector.shape_cast %186 : vector<1x1x32xf32> to vector<1x32xf32>
    %cst_80 = arith.constant dense<0.000000e+00> : vector<16xf32>
    %188 = vector.multi_reduction <add>, %183, %cst_80 [1] : vector<16x32xf32> to vector<16xf32>
    %189 = vector.shape_cast %188 : vector<16xf32> to vector<16x1xf32>
    %cst_81 = arith.constant 3.200000e+01 : f32
    %190 = vector.broadcast %cst_81 : f32 to vector<16x1xf32>
    %191 = arith.divf %189, %190 : vector<16x1xf32>
    %192 = vector.broadcast %191 : vector<16x1xf32> to vector<16x32xf32>
    %193 = arith.subf %183, %192 : vector<16x32xf32>
    %194 = arith.mulf %193, %193 : vector<16x32xf32>
    %cst_82 = arith.constant dense<0.000000e+00> : vector<16xf32>
    %195 = vector.multi_reduction <add>, %194, %cst_82 [1] : vector<16x32xf32> to vector<16xf32>
    %196 = vector.shape_cast %195 : vector<16xf32> to vector<16x1xf32>
    %cst_83 = arith.constant 3.200000e+01 : f32
    %197 = vector.broadcast %cst_83 : f32 to vector<16x1xf32>
    %198 = arith.divf %196, %197 : vector<16x1xf32>
    %199 = vector.broadcast %191 : vector<16x1xf32> to vector<16x32xf32>
    %200 = arith.subf %183, %199 : vector<16x32xf32>
    %cst_84 = arith.constant 9.99999974E-6 : f32
    %201 = vector.broadcast %cst_84 : f32 to vector<16x1xf32>
    %202 = arith.addf %198, %201 : vector<16x1xf32>
    %203 = math.rsqrt %202 : vector<16x1xf32>
    %204 = vector.broadcast %203 : vector<16x1xf32> to vector<16x32xf32>
    %205 = arith.mulf %200, %204 : vector<16x32xf32>
    %206 = vector.broadcast %185 : vector<1x32xf32> to vector<16x32xf32>
    %207 = arith.mulf %205, %206 : vector<16x32xf32>
    %208 = vector.broadcast %187 : vector<1x32xf32> to vector<16x32xf32>
    %209 = arith.addf %207, %208 : vector<16x32xf32>
    %c1 = arith.constant 1 : index
    %c0_85 = arith.constant 0 : index
    %c0_86 = arith.constant 0 : index
    %210 = vector.load %arg6[%c1, %c0_85, %c0_86] : memref<2x32x96xbf16, #tpu.memory_space<vmem>>, vector<1x32x96xbf16>
    %211 = vector.shape_cast %210 : vector<1x32x96xbf16> to vector<32x96xbf16>
    %c1_87 = arith.constant 1 : index
    %c0_88 = arith.constant 0 : index
    %c0_89 = arith.constant 0 : index
    %212 = vector.load %arg7[%c1_87, %c0_88, %c0_89] : memref<2x1x96xf32, #tpu.memory_space<vmem>>, vector<1x1x96xf32>
    %213 = vector.shape_cast %212 : vector<1x1x96xf32> to vector<1x96xf32>
    %c1_90 = arith.constant 1 : index
    %c0_91 = arith.constant 0 : index
    %c0_92 = arith.constant 0 : index
    %214 = vector.load %arg8[%c1_90, %c0_91, %c0_92] : memref<2x32x32xbf16, #tpu.memory_space<vmem>>, vector<1x32x32xbf16>
    %215 = vector.shape_cast %214 : vector<1x32x32xbf16> to vector<32x32xbf16>
    %c1_93 = arith.constant 1 : index
    %c0_94 = arith.constant 0 : index
    %c0_95 = arith.constant 0 : index
    %216 = vector.load %arg9[%c1_93, %c0_94, %c0_95] : memref<2x1x32xf32, #tpu.memory_space<vmem>>, vector<1x1x32xf32>
    %217 = vector.shape_cast %216 : vector<1x1x32xf32> to vector<1x32xf32>
    %c1_96 = arith.constant 1 : index
    %c0_97 = arith.constant 0 : index
    %c0_98 = arith.constant 0 : index
    %218 = vector.load %arg12[%c1_96, %c0_97, %c0_98] : memref<2x32x64xbf16, #tpu.memory_space<vmem>>, vector<1x32x64xbf16>
    %219 = vector.shape_cast %218 : vector<1x32x64xbf16> to vector<32x64xbf16>
    %c1_99 = arith.constant 1 : index
    %c0_100 = arith.constant 0 : index
    %c0_101 = arith.constant 0 : index
    %220 = vector.load %arg13[%c1_99, %c0_100, %c0_101] : memref<2x1x64xf32, #tpu.memory_space<vmem>>, vector<1x1x64xf32>
    %221 = vector.shape_cast %220 : vector<1x1x64xf32> to vector<1x64xf32>
    %c1_102 = arith.constant 1 : index
    %c0_103 = arith.constant 0 : index
    %c0_104 = arith.constant 0 : index
    %222 = vector.load %arg14[%c1_102, %c0_103, %c0_104] : memref<2x64x32xbf16, #tpu.memory_space<vmem>>, vector<1x64x32xbf16>
    %223 = vector.shape_cast %222 : vector<1x64x32xbf16> to vector<64x32xbf16>
    %c1_105 = arith.constant 1 : index
    %c0_106 = arith.constant 0 : index
    %c0_107 = arith.constant 0 : index
    %224 = vector.load %arg15[%c1_105, %c0_106, %c0_107] : memref<2x1x32xf32, #tpu.memory_space<vmem>>, vector<1x1x32xf32>
    %225 = vector.shape_cast %224 : vector<1x1x32xf32> to vector<1x32xf32>
    %226 = arith.truncf %209 : vector<16x32xf32> to vector<16x32xbf16>
    %cst_108 = arith.constant dense<0.000000e+00> : vector<16x96xf32>
    %227 = tpu.matmul %226, %211, %cst_108 {dimension_numbers = #tpu.dot_dimension_numbers<[1], [0], [0], [1], [0, 0, 1, 1], [], []>} : vector<16x32xbf16>, vector<32x96xbf16>, vector<16x96xf32> -> vector<16x96xf32>
    %228 = vector.broadcast %213 : vector<1x96xf32> to vector<16x96xf32>
    %229 = arith.addf %227, %228 : vector<16x96xf32>
    %230 = vector.extract_strided_slice %229 {offsets = [0, 0], sizes = [16, 32], strides = [1, 1]} : vector<16x96xf32> to vector<16x32xf32>
    %cst_109 = arith.constant 0.353553385 : f32
    %231 = vector.broadcast %cst_109 : f32 to vector<16x32xf32>
    %232 = arith.mulf %230, %231 : vector<16x32xf32>
    %233 = vector.shape_cast %232 : vector<16x32xf32> to vector<2x8x32xf32>
    %234 = arith.truncf %233 : vector<2x8x32xf32> to vector<2x8x32xbf16>
    %235 = vector.extract_strided_slice %229 {offsets = [0, 32], sizes = [16, 32], strides = [1, 1]} : vector<16x96xf32> to vector<16x32xf32>
    %236 = vector.shape_cast %235 : vector<16x32xf32> to vector<2x8x32xf32>
    %237 = arith.truncf %236 : vector<2x8x32xf32> to vector<2x8x32xbf16>
    %238 = vector.extract_strided_slice %229 {offsets = [0, 64], sizes = [16, 32], strides = [1, 1]} : vector<16x96xf32> to vector<16x32xf32>
    %239 = vector.shape_cast %238 : vector<16x32xf32> to vector<2x8x32xf32>
    %240 = arith.truncf %239 : vector<2x8x32xf32> to vector<2x8x32xbf16>
    %cst_110 = arith.constant 0.000000e+00 : f32
    %241 = vector.broadcast %cst_110 : f32 to vector<16x32xf32>
    %242 = vector.extract_strided_slice %234 {offsets = [0, 0, 0], sizes = [2, 8, 8], strides = [1, 1, 1]} : vector<2x8x32xbf16> to vector<2x8x8xbf16>
    %243 = vector.extract_strided_slice %237 {offsets = [0, 0, 0], sizes = [2, 8, 8], strides = [1, 1, 1]} : vector<2x8x32xbf16> to vector<2x8x8xbf16>
    %244 = vector.extract_strided_slice %240 {offsets = [0, 0, 0], sizes = [2, 8, 8], strides = [1, 1, 1]} : vector<2x8x32xbf16> to vector<2x8x8xbf16>
    "tpu.trace_start"() <{level = 10 : i32, message = "btd,bsd->bts"}> : () -> ()
    %cst_111 = arith.constant dense<0.000000e+00> : vector<2x8x8xf32>
    %245 = tpu.matmul %242, %243, %cst_111 {dimension_numbers = #tpu.dot_dimension_numbers<[2], [2], [1], [1], [0, 0, 0, 1, 1, 1], [0], [0]>} : vector<2x8x8xbf16>, vector<2x8x8xbf16>, vector<2x8x8xf32> -> vector<2x8x8xf32>
    "tpu.trace_stop"() : () -> ()
    %cst_112 = arith.constant dense<0xFF800000> : vector<2x8xf32>
    %246 = vector.multi_reduction <maximumf>, %245, %cst_112 [2] : vector<2x8x8xf32> to vector<2x8xf32>
    %247 = vector.shape_cast %246 : vector<2x8xf32> to vector<2x8x1xf32>
    %248 = vector.broadcast %247 : vector<2x8x1xf32> to vector<2x8x8xf32>
    %249 = arith.subf %245, %248 : vector<2x8x8xf32>
    %250 = math.exp %249 : vector<2x8x8xf32>
    %cst_113 = arith.constant dense<0.000000e+00> : vector<2x8xf32>
    %251 = vector.multi_reduction <add>, %250, %cst_113 [2] : vector<2x8x8xf32> to vector<2x8xf32>
    %252 = vector.shape_cast %251 : vector<2x8xf32> to vector<2x8x1xf32>
    %253 = tpu.reciprocal %252 {approx = true} : vector<2x8x1xf32> -> vector<2x8x1xf32>
    %254 = vector.broadcast %253 : vector<2x8x1xf32> to vector<2x8x8xf32>
    %255 = arith.mulf %250, %254 : vector<2x8x8xf32>
    %256 = arith.truncf %255 : vector<2x8x8xf32> to vector<2x8x8xbf16>
    "tpu.trace_start"() <{level = 10 : i32, message = "bts,bsd->btd"}> : () -> ()
    %cst_114 = arith.constant dense<0.000000e+00> : vector<2x8x8xf32>
    %257 = tpu.matmul %256, %244, %cst_114 {dimension_numbers = #tpu.dot_dimension_numbers<[2], [1], [1], [2], [0, 0, 0, 1, 1, 2], [0], [0]>} : vector<2x8x8xbf16>, vector<2x8x8xbf16>, vector<2x8x8xf32> -> vector<2x8x8xf32>
    "tpu.trace_stop"() : () -> ()
    %258 = vector.shape_cast %257 : vector<2x8x8xf32> to vector<16x8xf32>
    %259 = arith.truncf %258 : vector<16x8xf32> to vector<16x8xbf16>
    %260 = vector.extract_strided_slice %215 {offsets = [0, 0], sizes = [8, 32], strides = [1, 1]} : vector<32x32xbf16> to vector<8x32xbf16>
    %cst_115 = arith.constant dense<0.000000e+00> : vector<16x32xf32>
    %261 = tpu.matmul %259, %260, %cst_115 {dimension_numbers = #tpu.dot_dimension_numbers<[1], [0], [0], [1], [0, 0, 1, 1], [], []>} : vector<16x8xbf16>, vector<8x32xbf16>, vector<16x32xf32> -> vector<16x32xf32>
    %262 = arith.addf %241, %261 : vector<16x32xf32>
    %263 = vector.extract_strided_slice %234 {offsets = [0, 0, 8], sizes = [2, 8, 8], strides = [1, 1, 1]} : vector<2x8x32xbf16> to vector<2x8x8xbf16>
    %264 = vector.extract_strided_slice %237 {offsets = [0, 0, 8], sizes = [2, 8, 8], strides = [1, 1, 1]} : vector<2x8x32xbf16> to vector<2x8x8xbf16>
    %265 = vector.extract_strided_slice %240 {offsets = [0, 0, 8], sizes = [2, 8, 8], strides = [1, 1, 1]} : vector<2x8x32xbf16> to vector<2x8x8xbf16>
    "tpu.trace_start"() <{level = 10 : i32, message = "btd,bsd->bts"}> : () -> ()
    %cst_116 = arith.constant dense<0.000000e+00> : vector<2x8x8xf32>
    %266 = tpu.matmul %263, %264, %cst_116 {dimension_numbers = #tpu.dot_dimension_numbers<[2], [2], [1], [1], [0, 0, 0, 1, 1, 1], [0], [0]>} : vector<2x8x8xbf16>, vector<2x8x8xbf16>, vector<2x8x8xf32> -> vector<2x8x8xf32>
    "tpu.trace_stop"() : () -> ()
    %cst_117 = arith.constant dense<0xFF800000> : vector<2x8xf32>
    %267 = vector.multi_reduction <maximumf>, %266, %cst_117 [2] : vector<2x8x8xf32> to vector<2x8xf32>
    %268 = vector.shape_cast %267 : vector<2x8xf32> to vector<2x8x1xf32>
    %269 = vector.broadcast %268 : vector<2x8x1xf32> to vector<2x8x8xf32>
    %270 = arith.subf %266, %269 : vector<2x8x8xf32>
    %271 = math.exp %270 : vector<2x8x8xf32>
    %cst_118 = arith.constant dense<0.000000e+00> : vector<2x8xf32>
    %272 = vector.multi_reduction <add>, %271, %cst_118 [2] : vector<2x8x8xf32> to vector<2x8xf32>
    %273 = vector.shape_cast %272 : vector<2x8xf32> to vector<2x8x1xf32>
    %274 = tpu.reciprocal %273 {approx = true} : vector<2x8x1xf32> -> vector<2x8x1xf32>
    %275 = vector.broadcast %274 : vector<2x8x1xf32> to vector<2x8x8xf32>
    %276 = arith.mulf %271, %275 : vector<2x8x8xf32>
    %277 = arith.truncf %276 : vector<2x8x8xf32> to vector<2x8x8xbf16>
    "tpu.trace_start"() <{level = 10 : i32, message = "bts,bsd->btd"}> : () -> ()
    %cst_119 = arith.constant dense<0.000000e+00> : vector<2x8x8xf32>
    %278 = tpu.matmul %277, %265, %cst_119 {dimension_numbers = #tpu.dot_dimension_numbers<[2], [1], [1], [2], [0, 0, 0, 1, 1, 2], [0], [0]>} : vector<2x8x8xbf16>, vector<2x8x8xbf16>, vector<2x8x8xf32> -> vector<2x8x8xf32>
    "tpu.trace_stop"() : () -> ()
    %279 = vector.shape_cast %278 : vector<2x8x8xf32> to vector<16x8xf32>
    %280 = arith.truncf %279 : vector<16x8xf32> to vector<16x8xbf16>
    %281 = vector.extract_strided_slice %215 {offsets = [8, 0], sizes = [8, 32], strides = [1, 1]} : vector<32x32xbf16> to vector<8x32xbf16>
    %cst_120 = arith.constant dense<0.000000e+00> : vector<16x32xf32>
    %282 = tpu.matmul %280, %281, %cst_120 {dimension_numbers = #tpu.dot_dimension_numbers<[1], [0], [0], [1], [0, 0, 1, 1], [], []>} : vector<16x8xbf16>, vector<8x32xbf16>, vector<16x32xf32> -> vector<16x32xf32>
    %283 = arith.addf %262, %282 : vector<16x32xf32>
    %284 = vector.extract_strided_slice %234 {offsets = [0, 0, 16], sizes = [2, 8, 8], strides = [1, 1, 1]} : vector<2x8x32xbf16> to vector<2x8x8xbf16>
    %285 = vector.extract_strided_slice %237 {offsets = [0, 0, 16], sizes = [2, 8, 8], strides = [1, 1, 1]} : vector<2x8x32xbf16> to vector<2x8x8xbf16>
    %286 = vector.extract_strided_slice %240 {offsets = [0, 0, 16], sizes = [2, 8, 8], strides = [1, 1, 1]} : vector<2x8x32xbf16> to vector<2x8x8xbf16>
    "tpu.trace_start"() <{level = 10 : i32, message = "btd,bsd->bts"}> : () -> ()
    %cst_121 = arith.constant dense<0.000000e+00> : vector<2x8x8xf32>
    %287 = tpu.matmul %284, %285, %cst_121 {dimension_numbers = #tpu.dot_dimension_numbers<[2], [2], [1], [1], [0, 0, 0, 1, 1, 1], [0], [0]>} : vector<2x8x8xbf16>, vector<2x8x8xbf16>, vector<2x8x8xf32> -> vector<2x8x8xf32>
    "tpu.trace_stop"() : () -> ()
    %cst_122 = arith.constant dense<0xFF800000> : vector<2x8xf32>
    %288 = vector.multi_reduction <maximumf>, %287, %cst_122 [2] : vector<2x8x8xf32> to vector<2x8xf32>
    %289 = vector.shape_cast %288 : vector<2x8xf32> to vector<2x8x1xf32>
    %290 = vector.broadcast %289 : vector<2x8x1xf32> to vector<2x8x8xf32>
    %291 = arith.subf %287, %290 : vector<2x8x8xf32>
    %292 = math.exp %291 : vector<2x8x8xf32>
    %cst_123 = arith.constant dense<0.000000e+00> : vector<2x8xf32>
    %293 = vector.multi_reduction <add>, %292, %cst_123 [2] : vector<2x8x8xf32> to vector<2x8xf32>
    %294 = vector.shape_cast %293 : vector<2x8xf32> to vector<2x8x1xf32>
    %295 = tpu.reciprocal %294 {approx = true} : vector<2x8x1xf32> -> vector<2x8x1xf32>
    %296 = vector.broadcast %295 : vector<2x8x1xf32> to vector<2x8x8xf32>
    %297 = arith.mulf %292, %296 : vector<2x8x8xf32>
    %298 = arith.truncf %297 : vector<2x8x8xf32> to vector<2x8x8xbf16>
    "tpu.trace_start"() <{level = 10 : i32, message = "bts,bsd->btd"}> : () -> ()
    %cst_124 = arith.constant dense<0.000000e+00> : vector<2x8x8xf32>
    %299 = tpu.matmul %298, %286, %cst_124 {dimension_numbers = #tpu.dot_dimension_numbers<[2], [1], [1], [2], [0, 0, 0, 1, 1, 2], [0], [0]>} : vector<2x8x8xbf16>, vector<2x8x8xbf16>, vector<2x8x8xf32> -> vector<2x8x8xf32>
    "tpu.trace_stop"() : () -> ()
    %300 = vector.shape_cast %299 : vector<2x8x8xf32> to vector<16x8xf32>
    %301 = arith.truncf %300 : vector<16x8xf32> to vector<16x8xbf16>
    %302 = vector.extract_strided_slice %215 {offsets = [16, 0], sizes = [8, 32], strides = [1, 1]} : vector<32x32xbf16> to vector<8x32xbf16>
    %cst_125 = arith.constant dense<0.000000e+00> : vector<16x32xf32>
    %303 = tpu.matmul %301, %302, %cst_125 {dimension_numbers = #tpu.dot_dimension_numbers<[1], [0], [0], [1], [0, 0, 1, 1], [], []>} : vector<16x8xbf16>, vector<8x32xbf16>, vector<16x32xf32> -> vector<16x32xf32>
    %304 = arith.addf %283, %303 : vector<16x32xf32>
    %305 = vector.extract_strided_slice %234 {offsets = [0, 0, 24], sizes = [2, 8, 8], strides = [1, 1, 1]} : vector<2x8x32xbf16> to vector<2x8x8xbf16>
    %306 = vector.extract_strided_slice %237 {offsets = [0, 0, 24], sizes = [2, 8, 8], strides = [1, 1, 1]} : vector<2x8x32xbf16> to vector<2x8x8xbf16>
    %307 = vector.extract_strided_slice %240 {offsets = [0, 0, 24], sizes = [2, 8, 8], strides = [1, 1, 1]} : vector<2x8x32xbf16> to vector<2x8x8xbf16>
    "tpu.trace_start"() <{level = 10 : i32, message = "btd,bsd->bts"}> : () -> ()
    %cst_126 = arith.constant dense<0.000000e+00> : vector<2x8x8xf32>
    %308 = tpu.matmul %305, %306, %cst_126 {dimension_numbers = #tpu.dot_dimension_numbers<[2], [2], [1], [1], [0, 0, 0, 1, 1, 1], [0], [0]>} : vector<2x8x8xbf16>, vector<2x8x8xbf16>, vector<2x8x8xf32> -> vector<2x8x8xf32>
    "tpu.trace_stop"() : () -> ()
    %cst_127 = arith.constant dense<0xFF800000> : vector<2x8xf32>
    %309 = vector.multi_reduction <maximumf>, %308, %cst_127 [2] : vector<2x8x8xf32> to vector<2x8xf32>
    %310 = vector.shape_cast %309 : vector<2x8xf32> to vector<2x8x1xf32>
    %311 = vector.broadcast %310 : vector<2x8x1xf32> to vector<2x8x8xf32>
    %312 = arith.subf %308, %311 : vector<2x8x8xf32>
    %313 = math.exp %312 : vector<2x8x8xf32>
    %cst_128 = arith.constant dense<0.000000e+00> : vector<2x8xf32>
    %314 = vector.multi_reduction <add>, %313, %cst_128 [2] : vector<2x8x8xf32> to vector<2x8xf32>
    %315 = vector.shape_cast %314 : vector<2x8xf32> to vector<2x8x1xf32>
    %316 = tpu.reciprocal %315 {approx = true} : vector<2x8x1xf32> -> vector<2x8x1xf32>
    %317 = vector.broadcast %316 : vector<2x8x1xf32> to vector<2x8x8xf32>
    %318 = arith.mulf %313, %317 : vector<2x8x8xf32>
    %319 = arith.truncf %318 : vector<2x8x8xf32> to vector<2x8x8xbf16>
    "tpu.trace_start"() <{level = 10 : i32, message = "bts,bsd->btd"}> : () -> ()
    %cst_129 = arith.constant dense<0.000000e+00> : vector<2x8x8xf32>
    %320 = tpu.matmul %319, %307, %cst_129 {dimension_numbers = #tpu.dot_dimension_numbers<[2], [1], [1], [2], [0, 0, 0, 1, 1, 2], [0], [0]>} : vector<2x8x8xbf16>, vector<2x8x8xbf16>, vector<2x8x8xf32> -> vector<2x8x8xf32>
    "tpu.trace_stop"() : () -> ()
    %321 = vector.shape_cast %320 : vector<2x8x8xf32> to vector<16x8xf32>
    %322 = arith.truncf %321 : vector<16x8xf32> to vector<16x8xbf16>
    %323 = vector.extract_strided_slice %215 {offsets = [24, 0], sizes = [8, 32], strides = [1, 1]} : vector<32x32xbf16> to vector<8x32xbf16>
    %cst_130 = arith.constant dense<0.000000e+00> : vector<16x32xf32>
    %324 = tpu.matmul %322, %323, %cst_130 {dimension_numbers = #tpu.dot_dimension_numbers<[1], [0], [0], [1], [0, 0, 1, 1], [], []>} : vector<16x8xbf16>, vector<8x32xbf16>, vector<16x32xf32> -> vector<16x32xf32>
    %325 = arith.addf %304, %324 : vector<16x32xf32>
    %326 = vector.broadcast %217 : vector<1x32xf32> to vector<16x32xf32>
    %327 = arith.addf %325, %326 : vector<16x32xf32>
    %328 = arith.addf %209, %327 : vector<16x32xf32>
    %c1_131 = arith.constant 1 : index
    %c0_132 = arith.constant 0 : index
    %c0_133 = arith.constant 0 : index
    %329 = vector.load %arg10[%c1_131, %c0_132, %c0_133] : memref<2x1x32xf32, #tpu.memory_space<vmem>>, vector<1x1x32xf32>
    %330 = vector.shape_cast %329 : vector<1x1x32xf32> to vector<1x32xf32>
    %c1_134 = arith.constant 1 : index
    %c0_135 = arith.constant 0 : index
    %c0_136 = arith.constant 0 : index
    %331 = vector.load %arg11[%c1_134, %c0_135, %c0_136] : memref<2x1x32xf32, #tpu.memory_space<vmem>>, vector<1x1x32xf32>
    %332 = vector.shape_cast %331 : vector<1x1x32xf32> to vector<1x32xf32>
    %cst_137 = arith.constant dense<0.000000e+00> : vector<16xf32>
    %333 = vector.multi_reduction <add>, %328, %cst_137 [1] : vector<16x32xf32> to vector<16xf32>
    %334 = vector.shape_cast %333 : vector<16xf32> to vector<16x1xf32>
    %cst_138 = arith.constant 3.200000e+01 : f32
    %335 = vector.broadcast %cst_138 : f32 to vector<16x1xf32>
    %336 = arith.divf %334, %335 : vector<16x1xf32>
    %337 = vector.broadcast %336 : vector<16x1xf32> to vector<16x32xf32>
    %338 = arith.subf %328, %337 : vector<16x32xf32>
    %339 = arith.mulf %338, %338 : vector<16x32xf32>
    %cst_139 = arith.constant dense<0.000000e+00> : vector<16xf32>
    %340 = vector.multi_reduction <add>, %339, %cst_139 [1] : vector<16x32xf32> to vector<16xf32>
    %341 = vector.shape_cast %340 : vector<16xf32> to vector<16x1xf32>
    %cst_140 = arith.constant 3.200000e+01 : f32
    %342 = vector.broadcast %cst_140 : f32 to vector<16x1xf32>
    %343 = arith.divf %341, %342 : vector<16x1xf32>
    %344 = vector.broadcast %336 : vector<16x1xf32> to vector<16x32xf32>
    %345 = arith.subf %328, %344 : vector<16x32xf32>
    %cst_141 = arith.constant 9.99999974E-6 : f32
    %346 = vector.broadcast %cst_141 : f32 to vector<16x1xf32>
    %347 = arith.addf %343, %346 : vector<16x1xf32>
    %348 = math.rsqrt %347 : vector<16x1xf32>
    %349 = vector.broadcast %348 : vector<16x1xf32> to vector<16x32xf32>
    %350 = arith.mulf %345, %349 : vector<16x32xf32>
    %351 = vector.broadcast %330 : vector<1x32xf32> to vector<16x32xf32>
    %352 = arith.mulf %350, %351 : vector<16x32xf32>
    %353 = vector.broadcast %332 : vector<1x32xf32> to vector<16x32xf32>
    %354 = arith.addf %352, %353 : vector<16x32xf32>
    %355 = arith.truncf %354 : vector<16x32xf32> to vector<16x32xbf16>
    %cst_142 = arith.constant dense<0.000000e+00> : vector<16x64xf32>
    %356 = tpu.matmul %355, %219, %cst_142 {dimension_numbers = #tpu.dot_dimension_numbers<[1], [0], [0], [1], [0, 0, 1, 1], [], []>} : vector<16x32xbf16>, vector<32x64xbf16>, vector<16x64xf32> -> vector<16x64xf32>
    %357 = vector.broadcast %221 : vector<1x64xf32> to vector<16x64xf32>
    %358 = arith.addf %356, %357 : vector<16x64xf32>
    %cst_143 = arith.constant 5.000000e-01 : f32
    %359 = vector.broadcast %cst_143 : f32 to vector<16x64xf32>
    %360 = arith.mulf %359, %358 : vector<16x64xf32>
    %cst_144 = arith.constant 0.707106769 : f32
    %361 = vector.broadcast %cst_144 : f32 to vector<16x64xf32>
    %362 = arith.mulf %358, %361 : vector<16x64xf32>
    %363 = math.erf %362 : vector<16x64xf32>
    %cst_145 = arith.constant 1.000000e+00 : f32
    %364 = vector.broadcast %cst_145 : f32 to vector<16x64xf32>
    %365 = arith.addf %364, %363 : vector<16x64xf32>
    %366 = arith.mulf %360, %365 : vector<16x64xf32>
    %367 = arith.truncf %366 : vector<16x64xf32> to vector<16x64xbf16>
    %cst_146 = arith.constant dense<0.000000e+00> : vector<16x32xf32>
    %368 = tpu.matmul %367, %223, %cst_146 {dimension_numbers = #tpu.dot_dimension_numbers<[1], [0], [0], [1], [0, 0, 1, 1], [], []>} : vector<16x64xbf16>, vector<64x32xbf16>, vector<16x32xf32> -> vector<16x32xf32>
    %369 = vector.broadcast %225 : vector<1x32xf32> to vector<16x32xf32>
    %370 = arith.addf %368, %369 : vector<16x32xf32>
    %371 = arith.addf %354, %370 : vector<16x32xf32>
    %c1_147 = arith.constant 1 : index
    %c0_148 = arith.constant 0 : index
    %c0_149 = arith.constant 0 : index
    %372 = vector.load %arg16[%c1_147, %c0_148, %c0_149] : memref<2x1x32xf32, #tpu.memory_space<vmem>>, vector<1x1x32xf32>
    %373 = vector.shape_cast %372 : vector<1x1x32xf32> to vector<1x32xf32>
    %c1_150 = arith.constant 1 : index
    %c0_151 = arith.constant 0 : index
    %c0_152 = arith.constant 0 : index
    %374 = vector.load %arg17[%c1_150, %c0_151, %c0_152] : memref<2x1x32xf32, #tpu.memory_space<vmem>>, vector<1x1x32xf32>
    %375 = vector.shape_cast %374 : vector<1x1x32xf32> to vector<1x32xf32>
    %cst_153 = arith.constant dense<0.000000e+00> : vector<16xf32>
    %376 = vector.multi_reduction <add>, %371, %cst_153 [1] : vector<16x32xf32> to vector<16xf32>
    %377 = vector.shape_cast %376 : vector<16xf32> to vector<16x1xf32>
    %cst_154 = arith.constant 3.200000e+01 : f32
    %378 = vector.broadcast %cst_154 : f32 to vector<16x1xf32>
    %379 = arith.divf %377, %378 : vector<16x1xf32>
    %380 = vector.broadcast %379 : vector<16x1xf32> to vector<16x32xf32>
    %381 = arith.subf %371, %380 : vector<16x32xf32>
    %382 = arith.mulf %381, %381 : vector<16x32xf32>
    %cst_155 = arith.constant dense<0.000000e+00> : vector<16xf32>
    %383 = vector.multi_reduction <add>, %382, %cst_155 [1] : vector<16x32xf32> to vector<16xf32>
    %384 = vector.shape_cast %383 : vector<16xf32> to vector<16x1xf32>
    %cst_156 = arith.constant 3.200000e+01 : f32
    %385 = vector.broadcast %cst_156 : f32 to vector<16x1xf32>
    %386 = arith.divf %384, %385 : vector<16x1xf32>
    %387 = vector.broadcast %379 : vector<16x1xf32> to vector<16x32xf32>
    %388 = arith.subf %371, %387 : vector<16x32xf32>
    %cst_157 = arith.constant 9.99999974E-6 : f32
    %389 = vector.broadcast %cst_157 : f32 to vector<16x1xf32>
    %390 = arith.addf %386, %389 : vector<16x1xf32>
    %391 = math.rsqrt %390 : vector<16x1xf32>
    %392 = vector.broadcast %391 : vector<16x1xf32> to vector<16x32xf32>
    %393 = arith.mulf %388, %392 : vector<16x32xf32>
    %394 = vector.broadcast %373 : vector<1x32xf32> to vector<16x32xf32>
    %395 = arith.mulf %393, %394 : vector<16x32xf32>
    %396 = vector.broadcast %375 : vector<1x32xf32> to vector<16x32xf32>
    %397 = arith.addf %395, %396 : vector<16x32xf32>
    %398 = arith.truncf %397 : vector<16x32xf32> to vector<16x32xbf16>
    %c0_158 = arith.constant 0 : index
    %c0_159 = arith.constant 0 : index
    %399 = vector.load %arg18[%c0_158, %c0_159] : memref<32x1xbf16, #tpu.memory_space<vmem>>, vector<32x1xbf16>
    %cst_160 = arith.constant dense<0.000000e+00> : vector<16x1xf32>
    %400 = tpu.matmul %398, %399, %cst_160 {dimension_numbers = #tpu.dot_dimension_numbers<[1], [0], [0], [1], [0, 0, 1, 1], [], []>} : vector<16x32xbf16>, vector<32x1xbf16>, vector<16x1xf32> -> vector<16x1xf32>
    %c0_161 = arith.constant 0 : index
    %c0_162 = arith.constant 0 : index
    %401 = vector.load %arg19[%c0_161, %c0_162] : memref<1x1xf32, #tpu.memory_space<vmem>>, vector<1x1xf32>
    %402 = vector.broadcast %401 : vector<1x1xf32> to vector<16x1xf32>
    %403 = arith.addf %400, %402 : vector<16x1xf32>
    %404 = vector.shape_cast %403 : vector<16x1xf32> to vector<2x8x1xf32>
    %c0_163 = arith.constant 0 : index
    %c0_164 = arith.constant 0 : index
    %c0_165 = arith.constant 0 : index
    %405 = vector.load %arg20[%c0_163, %c0_164, %c0_165] : memref<2x8x1xf32, #tpu.memory_space<vmem>>, vector<2x8x1xf32>
    tpu.vector_store %arg20[%c0_163, %c0_164, %c0_165], %404 {strides = array<i32>} : memref<2x8x1xf32, #tpu.memory_space<vmem>>, vector<2x8x1xf32>,
    return
  }
  func.func @transform_0(%arg0: i32) -> (i32, i32, i32) {
    %c0_i32 = arith.constant 0 : i32
    %c0_i32_0 = arith.constant 0 : i32
    %c0_i32_1 = arith.constant 0 : i32
    return %arg0, %c0_i32, %c0_i32_0 : i32, i32, i32
  }
  func.func @transform_1(%arg0: i32) -> (i32, i32, i32) {
    %c0_i32 = arith.constant 0 : i32
    %c0_i32_0 = arith.constant 0 : i32
    %c0_i32_1 = arith.constant 0 : i32
    return %arg0, %c0_i32, %c0_i32_0 : i32, i32, i32
  }
  func.func @transform_2(%arg0: i32) -> (i32, i32) {
    %c0_i32 = arith.constant 0 : i32
    %c0_i32_0 = arith.constant 0 : i32
    %c0_i32_1 = arith.constant 0 : i32
    return %c0_i32, %c0_i32_0 : i32, i32
  }
  func.func @transform_3(%arg0: i32) -> (i32, i32) {
    %c0_i32 = arith.constant 0 : i32
    %c0_i32_0 = arith.constant 0 : i32
    %c0_i32_1 = arith.constant 0 : i32
    return %c0_i32, %c0_i32_0 : i32, i32
  }
  func.func @transform_4(%arg0: i32) -> (i32, i32) {
    %c0_i32 = arith.constant 0 : i32
    %c0_i32_0 = arith.constant 0 : i32
    %c0_i32_1 = arith.constant 0 : i32
    return %c0_i32, %c0_i32_0 : i32, i32
  }
  func.func @transform_5(%arg0: i32) -> (i32, i32, i32) {
    %c0_i32 = arith.constant 0 : i32
    %c0_i32_0 = arith.constant 0 : i32
    %c0_i32_1 = arith.constant 0 : i32
    %c0_i32_2 = arith.constant 0 : i32
    return %c0_i32, %c0_i32_0, %c0_i32_1 : i32, i32, i32
  }
  func.func @transform_6(%arg0: i32) -> (i32, i32, i32) {
    %c0_i32 = arith.constant 0 : i32
    %c0_i32_0 = arith.constant 0 : i32
    %c0_i32_1 = arith.constant 0 : i32
    %c0_i32_2 = arith.constant 0 : i32
    return %c0_i32, %c0_i32_0, %c0_i32_1 : i32, i32, i32
  }
  func.func @transform_7(%arg0: i32) -> (i32, i32, i32) {
    %c0_i32 = arith.constant 0 : i32
    %c0_i32_0 = arith.constant 0 : i32
    %c0_i32_1 = arith.constant 0 : i32
    %c0_i32_2 = arith.constant 0 : i32
    return %c0_i32, %c0_i32_0, %c0_i32_1 : i32, i32, i32
  }
  func.func @transform_8(%arg0: i32) -> (i32, i32, i32) {
    %c0_i32 = arith.constant 0 : i32
    %c0_i32_0 = arith.constant 0 : i32
    %c0_i32_1 = arith.constant 0 : i32
    %c0_i32_2 = arith.constant 0 : i32
    return %c0_i32, %c0_i32_0, %c0_i32_1 : i32, i32, i32
  }
  func.func @transform_9(%arg0: i32) -> (i32, i32, i32) {
    %c0_i32 = arith.constant 0 : i32
    %c0_i32_0 = arith.constant 0 : i32
    %c0_i32_1 = arith.constant 0 : i32
    %c0_i32_2 = arith.constant 0 : i32
    return %c0_i32, %c0_i32_0, %c0_i32_1 : i32, i32, i32
  }
  func.func @transform_10(%arg0: i32) -> (i32, i32, i32) {
    %c0_i32 = arith.constant 0 : i32
    %c0_i32_0 = arith.constant 0 : i32
    %c0_i32_1 = arith.constant 0 : i32
    %c0_i32_2 = arith.constant 0 : i32
    return %c0_i32, %c0_i32_0, %c0_i32_1 : i32, i32, i32
  }
  func.func @transform_11(%arg0: i32) -> (i32, i32, i32) {
    %c0_i32 = arith.constant 0 : i32
    %c0_i32_0 = arith.constant 0 : i32
    %c0_i32_1 = arith.constant 0 : i32
    %c0_i32_2 = arith.constant 0 : i32
    return %c0_i32, %c0_i32_0, %c0_i32_1 : i32, i32, i32
  }
  func.func @transform_12(%arg0: i32) -> (i32, i32, i32) {
    %c0_i32 = arith.constant 0 : i32
    %c0_i32_0 = arith.constant 0 : i32
    %c0_i32_1 = arith.constant 0 : i32
    %c0_i32_2 = arith.constant 0 : i32
    return %c0_i32, %c0_i32_0, %c0_i32_1 : i32, i32, i32
  }
  func.func @transform_13(%arg0: i32) -> (i32, i32, i32) {
    %c0_i32 = arith.constant 0 : i32
    %c0_i32_0 = arith.constant 0 : i32
    %c0_i32_1 = arith.constant 0 : i32
    %c0_i32_2 = arith.constant 0 : i32
    return %c0_i32, %c0_i32_0, %c0_i32_1 : i32, i32, i32
  }
  func.func @transform_14(%arg0: i32) -> (i32, i32, i32) {
    %c0_i32 = arith.constant 0 : i32
    %c0_i32_0 = arith.constant 0 : i32
    %c0_i32_1 = arith.constant 0 : i32
    %c0_i32_2 = arith.constant 0 : i32
    return %c0_i32, %c0_i32_0, %c0_i32_1 : i32, i32, i32
  }
  func.func @transform_15(%arg0: i32) -> (i32, i32, i32) {
    %c0_i32 = arith.constant 0 : i32
    %c0_i32_0 = arith.constant 0 : i32
    %c0_i32_1 = arith.constant 0 : i32
    %c0_i32_2 = arith.constant 0 : i32
    return %c0_i32, %c0_i32_0, %c0_i32_1 : i32, i32, i32
  }
  func.func @transform_16(%arg0: i32) -> (i32, i32, i32) {
    %c0_i32 = arith.constant 0 : i32
    %c0_i32_0 = arith.constant 0 : i32
    %c0_i32_1 = arith.constant 0 : i32
    %c0_i32_2 = arith.constant 0 : i32
    return %c0_i32, %c0_i32_0, %c0_i32_1 : i32, i32, i32
  }
  func.func @transform_17(%arg0: i32) -> (i32, i32) {
    %c0_i32 = arith.constant 0 : i32
    %c0_i32_0 = arith.constant 0 : i32
    %c0_i32_1 = arith.constant 0 : i32
    return %c0_i32, %c0_i32_0 : i32, i32
  }
  func.func @transform_18(%arg0: i32) -> (i32, i32) {
    %c0_i32 = arith.constant 0 : i32
    %c0_i32_0 = arith.constant 0 : i32
    %c0_i32_1 = arith.constant 0 : i32
    return %c0_i32, %c0_i32_0 : i32, i32
  }
  func.func @transform_19(%arg0: i32) -> (i32, i32, i32) {
    %c0_i32 = arith.constant 0 : i32
    %c0_i32_0 = arith.constant 0 : i32
    %c0_i32_1 = arith.constant 0 : i32
    return %arg0, %c0_i32, %c0_i32_0 : i32, i32, i32
  }
}

</mosaic_0001>

<bundles_post_ra>
// kernel: tpu_custom_call.1
= control target key start
LH: loop header
LB: loop body
LE: loop exit
PB: predicated region body
PF: predicated region fallthrough
CT: control target
= control target key end

     0   :  { %v3688_v0 = vmov 0   ;;  %v3689_v8 = vmov 0.0   ;;  %vm3690_vm0 = vmmov 0   ;;  %vm163_vm1 = vcmask 261120   ;;  %s3691_s23 = smov 96   ;;  %s3692_s24 = smov 64   ;;  %s4399_s0 = inlined_call_operand.vmem [shape: f32[2,8,1], index: 0, kind: input, shape index: {}]   ;;  %s4400_s1 = inlined_call_operand.vmem [shape: f32[2,8,1], index: 1, kind: input, shape index: {}]   ;;  %s4401_s5 = inlined_call_operand.vmem [shape: bf16[2,32,96], index: 5, kind: input, shape index: {}]   ;;  %s4402_s2 = inlined_call_operand.vmem [shape: f32[8,32], index: 2, kind: input, shape index: {}]   ;;  %s4403_s3 = inlined_call_operand.vmem [shape: f32[8,32], index: 3, kind: input, shape index: {}]   ;;  %s4404_s4 = inlined_call_operand.vmem [shape: f32[1,32], index: 4, kind: input, shape index: {}]   ;;  %s4405_s6 = inlined_call_operand.vmem [shape: f32[2,1,96], index: 6, kind: input, shape index: {}]   ;;  %s4406_s7 = inlined_call_operand.vmem [shape: bf16[2,32,32], index: 7, kind: input, shape index: {}]   ;;  %s4407_s8 = inlined_call_operand.vmem [shape: f32[2,1,32], index: 8, kind: input, shape index: {}]   ;;  %s4408_s11 = inlined_call_operand.vmem [shape: bf16[2,32,64], index: 11, kind: input, shape index: {}]   ;;  %s4409_s9 = inlined_call_operand.vmem [shape: f32[2,1,32], index: 9, kind: input, shape index: {}]   ;;  %s4410_s10 = inlined_call_operand.vmem [shape: f32[2,1,32], index: 10, kind: input, shape index: {}]   ;;  %s4411_s13 = inlined_call_operand.vmem [shape: bf16[2,64,32], index: 13, kind: input, shape index: {}]   ;;  %s4412_s12 = inlined_call_operand.vmem [shape: f32[2,1,64], index: 12, kind: input, shape index: {}]   ;;  %s4413_s14 = inlined_call_operand.vmem [shape: f32[2,1,32], index: 14, kind: input, shape index: {}]   ;;  %s4414_s15 = inlined_call_operand.vmem [shape: f32[2,1,32], index: 15, kind: input, shape index: {}]   ;;  %s4415_s16 = inlined_call_operand.vmem [shape: f32[2,1,32], index: 16, kind: input, shape index: {}]   ;;  %s4416_s17 = inlined_call_operand.vmem [shape: bf16[32,1], index: 17, kind: input, shape index: {}]   ;;  %s4417_s18 = inlined_call_operand.<no memory space> [shape: f32[1,1], index: 18, kind: input, shape index: {}]   ;;  %s4418_s19 = inlined_call_operand.vmem [shape: f32[2,8,1], index: 19, kind: output, shape index: {}]  }
   0x1   :  { %4426 = sst [smem:[#allocation3_spill]] %s4399_s0  ;;  %3580 = vset.pattern.permute.xlu0 %v3688_v0  ;;  %3581 = vset.pattern.permute.xlu1 %v3688_v0  ;;  %v70_v14 = vld [vmem:[%s4403_s3] sm:$0xff]  ;;  %vm217_vm2 = vcmask 64512   ;;  %s3693_s25 = smov 88   ;;  %vm342_vm3 = vcmask 1043456   ;;  %vm1451_vm4 = vcmask 523264  }
   0x2   :  { %4427 = sst [smem:[#allocation4_spill]] %s4400_s1  ;;  %s4430_s20 = sld [smem:[#allocation3_spill]]  ;;  %3262 = vmatprep.subr.bf16.mxu0 %v3689_v8  ;;  %3270 = vmatprep.subr.bf16.mxu1 %v3689_v8  ;;  %v3046_v18 = vld [vmem:[%s4404_s4] ss:$0 sm:$0xff]  ;;  %vm3039_vm5 = vcmask 7168  }
   0x3   :  { %4428 = sst [smem:[#allocation5_spill]] %s4401_s5  ;;  %s4431_s22 = sld [smem:[#allocation4_spill]]  ;;  %3266 = vmatprep.mubr.msk.bf16.mxu0 %vm3690_vm0, %v3689_v8  ;;  %3272 = vmatprep.mubr.msk.bf16.mxu1 %vm3690_vm0, %v3689_v8  ;;  %v3047_v30 = vld [vmem:[%s4405_s6] ss:$0 sm:$0xff] }
   0x4   :  { %4429 = sst [smem:[#allocation6_spill]] %s4402_s2  ;;  %s4432_s27 = sld [smem:[#allocation5_spill]] }
   0x5   :  { %s3694_s2 = smov 120   ;;  %s3695_s26 = smov 56  }
   0x6   :  { %s3696_s28 = smov 80   ;;  %s3697_s29 = smov 112  }
   0x7   :  { %s3698_s1 = smov 48   ;;  %s4424_s5 = smov 104  }
   0x8   :  { %v65_v1 = vld [vmem:[%s4430_s20] sm:$0xff]  ;;  %v66_v5 = vld [vmem:[%s4430_s20 + $0x8] sm:$0xff]  ;;  %s4433_s20 = sld [smem:[#allocation6_spill]]  ;;  %s4422_s0 = smov 40  }
   0x9   :  { %v67_v2 = vld [vmem:[%s4431_s22] sm:$0xff]  ;;  %v68_v3 = vld [vmem:[%s4431_s22 + $0x8] sm:$0xff]  ;;  %74 = vperm.xlu0 %3580, %v65_v1   ;;  %s3699_s22 = smov 72  }
   0xa   :  { %v86_v4 = vsub.f32 1.0, %v67_v2  ;;  %v87_v6 = vsub.f32 1.0, %v68_v3  ;;  %v3582_v7 = vld [vmem:[%s4432_s27] sm:$0xff]   ;;  %v3583_v9 = vld [vmem:[%s4432_s27 + $0x8] sm:$0xff]  }
   0xb   :  { %3263 = vmatpush3.bf16.msra.mxu0 %v3582_v7 }
   0xc   :  { %90 = vperm.xlu1 %3581, %v86_v4   ;;  %3264 = vmatprep.subr.bf16.mxu0 %v3689_v8 }
   0xd   :  { %79 = vperm.xlu0 %3580, %v66_v5  }
   0xe   :  { %v69_v10 = vld [vmem:[%s4433_s20] sm:$0xff] }
   0xf   :  { %3265 = vmatpush3.bf16.msra.mxu0 %v3583_v9 }
  0x10   :  { %95 = vperm.xlu1 %3581, %v87_v6   ;;  %3276 = vmatprep.subr.bf16.mxu0 %v3689_v8 }
  0x11   :  { %108 = vperm.xlu0 %3580, %v67_v2  }
  0x14   :  { %113 = vperm.xlu1 %3581, %v68_v3  }
  0x88   :  { %v75_v11 = vpop.permute.xlu0 %74 }
  0x89   :  { %v82_v13 = vmul.f32 %v75_v11, %v69_v10 }
  0x8b   :  { %v91_v12 = vpop.permute.xlu1 %90  ;;  %v84_v19 = vadd.f32 %v82_v13, %v70_v14 }
  0x8c   :  { %v80_v15 = vpop.permute.xlu0 %79 }
  0x8d   :  { %v83_v16 = vmul.f32 %v80_v15, %v69_v10  ;;  %v98_v24 = vmul.f32 %v91_v12, %v84_v19 }
  0x8f   :  { %v96_v17 = vpop.permute.xlu1 %95  ;;  %v85_v20 = vadd.f32 %v83_v16, %v70_v14 }
  0x90   :  { %v109_v21 = vpop.permute.xlu0 %108 }
  0x91   :  { %v116_v22 = vmul.f32 %v3046_v18, %v109_v21  ;;  %v99_v25 = vmul.f32 %v96_v17, %v85_v20 }
  0x93   :  { %v114_v23 = vpop.permute.xlu1 %113  ;;  %v3837_v27 = vadd.f32 %v116_v22, %v98_v24 }
  0x94   :  { %v117_v26 = vmul.f32 %v3046_v18, %v114_v23 }
  0x96   :  { %v3839_v28 = vadd.f32 %v117_v26, %v99_v25 }
  0x98   :  { %v144_v29 = vpack.c.bf16 %v3839_v28, %v3837_v27 }
  0x9a   :  { %3267 = vmatmul.mubr.msk.bf16.vlgmr.msra.gmra.mrb[0].mxu0 %vm163_vm1, %v144_v29 }
  0x9b   :  { %3278 = vmatprep.mubr.msk.bf16.mxu0 %vm3690_vm0, %v3689_v8 }
 0x16d   :  { %v201_v31 = vpop.f32.mrb[0].mxu0 }
 0x16e   :  { %v202_v32 = vadd.f32 %v3047_v30, %v201_v31  ;;  %v3268_v33 = vpop.f32.mrb[1].mxu0 }
 0x16f   :  { %v204_v34 = vpop.f32.mrb[2].mxu0 }
 0x170   :  { %v3849_v35 = vpack.c.bf16 %v202_v32, %v202_v32  ;;  %v205_v36 = vadd.f32 %v3047_v30, %v204_v34  ;;  %v3269_v37 = vpop.f32.mrb[3].mxu0  ;;  %v208_v42 = vmul.f32 0.35355338, %v202_v32 }
 0x172   :  { %v3851_v38 = vpack.c.bf16 %v205_v36, %v205_v36  ;;  %215 = vrot.lane.b32.xlu0 %v3849_v35, %s3691_s23  ;;  %v209_v44 = vmul.f32 0.35355338, %v205_v36  ;;  %v3861_v45 = vpack.c.bf16 %v208_v42, %v208_v42 }
 0x174   :  { %265 = vrot.lane.b32.xlu1 %v3851_v38, %s3691_s23  ;;  %v3863_v46 = vpack.c.bf16 %v209_v44, %v209_v44 }
 0x1e4   :  { %v216_v39 = vpop.permute.xlu0 %215 }
 0x1e5   :  { %v222_v40 = vsel %vm217_vm2, %v216_v39, 0 }
 0x1e6   :  { %3271 = vmatpush3.bf16.xpose.msra.mxu1 %v222_v40  ;;  %v266_v41 = vpop.permute.xlu1 %265 }
 0x1e7   :  { %v271_v43 = vsel %vm217_vm2, %v266_v41, 0  ;;  %3282 = vmatprep.subr.bf16.mxu1 %v3689_v8 }
 0x1e8   :  { %3277 = vmatpush3.bf16.xpose.msra.mxu0 %v271_v43 }
 0x1e9   :  { %3288 = vmatprep.subr.bf16.mxu0 %v3689_v8 }
 0x1ed   :  { %3273 = vmatmul.mubr.msk.bf16.vlgmr.msra.gmra.mrb[0].mxu1 %vm217_vm2, %v3861_v45 }
 0x1ee   :  { %3284 = vmatprep.mubr.msk.bf16.mxu1 %vm3690_vm0, %v3689_v8 }
 0x1ef   :  { %3279 = vmatmul.mubr.msk.bf16.vlgmr.msra.gmra.mrb[4].mxu0 %vm217_vm2, %v3863_v46 }
 0x1f0   :  { %3290 = vmatprep.mubr.msk.bf16.mxu0 %vm3690_vm0, %v3689_v8 }
 0x2c0   :  { %v258_v47 = vpop.f32.mrb[0].mxu1 }
 0x2c1   :  { %v3274_v48 = vpop.f32.mrb[1].mxu1  ;;  %v313_v49 = vsel %vm217_vm2, %v258_v47, -inf }
 0x2c2   :  { %314 = vmax.xlane.f32.xlu0 %v313_v49  ;;  %v261_v50 = vpop.f32.mrb[2].mxu1  ;;  %v307_v51 = vpop.f32.mrb[4].mxu0 }
 0x2c3   :  { %v3275_v52 = vpop.f32.mrb[3].mxu1  ;;  %v3280_v53 = vpop.f32.mrb[5].mxu0  ;;  %v316_v54 = vsel %vm217_vm2, %v307_v51, -inf }
 0x2c4   :  { %317 = vmax.xlane.f32.xlu1 %v316_v54  ;;  %v310_v55 = vpop.f32.mrb[6].mxu0 }
 0x2c5   :  { %v3281_v56 = vpop.f32.mrb[7].mxu0 }
 0x2d5   :  { %337 = vrot.lane.b32.xlu1 %v3849_v35, %s3692_s24 }
 0x2d9   :  { %438 = vrot.lane.b32.xlu1 %v3849_v35, %s3693_s25 }
 0x2dd   :  { %489 = vrot.lane.b32.xlu1 %v3851_v38, %s3693_s25 }
 0x2e1   :  { %487 = vrot.lane.b32.xlu1 %v3863_v46, %s3694_s2 }
 0x34f   :  { %v315_v57 = vpop.xlane.xlu0 %314 }
 0x350   :  { %v319_v58 = vsub.f32 %v258_v47, %v315_v57 }
 0x351   :  { %v318_v59 = vpop.xlane.xlu1 %317 }
 0x352   :  { %v321_v60 = vmul.f32 1.442695, %v319_v58  ;;  %v320_v61 = vsub.f32 %v307_v51, %v318_v59 }
 0x354   :  { %3600 = vpow2.f32 %v321_v60  ;;  %v323_v62 = vmul.f32 1.442695, %v320_v61 }
 0x355   :  { %v338_v63 = vpop.permute.xlu1 %337 }
 0x356   :  { %3602 = vpow2.f32 %v323_v62  ;;  %v344_v0 = vsel %vm342_vm3, %v338_v63, 0 }
 0x357   :  { %3283 = vmatpush3.bf16.msra.mxu1 %v344_v0  ;;  %v126_v0 = vld [vmem:[%s4406_s7 + $0x4] sm:$0xf] }
 0x358   :  { %3294 = vmatprep.subr.bf16.mxu1 %v3689_v8 }
 0x359   :  { %v439_v11 = vpop.permute.xlu1 %438 }
 0x35a   :  { %v444_v15 = vsel %vm217_vm2, %v439_v11, 0 }
 0x35d   :  { %v490_v17 = vpop.permute.xlu1 %489 }
 0x35e   :  { %v3601_v1 = vpop.eup %3600  ;;  %v495_v19 = vsel %vm217_vm2, %v490_v17, 0 }
 0x35f   :  { %v325_v2 = vsel %vm217_vm2, %v3601_v1, 0.0 }
 0x360   :  { %v3603_v3 = vpop.eup %3602  ;;  %326 = vadd.xlane.f32.xlu0 %v325_v2 }
 0x361   :  { %v328_v4 = vsel %vm217_vm2, %v3603_v3, 0.0  ;;  %v488_v21 = vpop.permute.xlu1 %487 }
 0x364   :  { %329 = vadd.xlane.f32.xlu0 %v328_v4 }
 0x37a   :  { %386 = vrot.lane.b32.xlu0 %v3851_v38, %s3692_s24 }
 0x37e   :  { %436 = vrot.lane.b32.xlu0 %v3861_v45, %s3694_s2 }
 0x3ed   :  { %v327_v5 = vpop.xlane.xlu0 %326 }
 0x3ee   :  { %3604 = vrcp.f32 %v327_v5  ;;  %v125_v5 = vld [vmem:[%s4406_s7] sm:$0xf] }
 0x3f1   :  { %v330_v6 = vpop.xlane.xlu0 %329 }
 0x3f2   :  { %3606 = vrcp.f32 %v330_v6 }
 0x3f5   :  { %v387_v7 = vpop.permute.xlu0 %386 }
 0x3f6   :  { %v392_v9 = vsel %vm342_vm3, %v387_v7, 0 }
 0x3f7   :  { %3289 = vmatpush3.bf16.msra.mxu0 %v392_v9  ;;  %v709_v9 = vsel %vm342_vm3, %v125_v5, 0 }
 0x3f8   :  { %v3605_v10 = vpop.eup %3604  ;;  %3300 = vmatprep.subr.bf16.mxu0 %v3689_v8 }
 0x3f9   :  { %v333_v12 = vmul.f32 %v3605_v10, %v3601_v1  ;;  %v437_v20 = vpop.permute.xlu0 %436 }
 0x3fb   :  { %v335_v13 = vpack.c.bf16 %v333_v12, %v333_v12 }
 0x3fc   :  { %v3607_v14 = vpop.eup %3606 }
 0x3fd   :  { %v334_v16 = vmul.f32 %v3607_v14, %v3603_v3  ;;  %3285 = vmatmul.mubr.msk.bf16.vlgmr.msra.gmra.mrb[4].mxu1 %vm217_vm2, %v335_v13  ;;  %v662_v3 = vsel %vm342_vm3, %v126_v0, 0 }
 0x3fe   :  { %3295 = vmatpush3.bf16.xpose.msra.mxu1 %v444_v15  ;;  %3296 = vmatprep.mubr.msk.bf16.mxu1 %vm3690_vm0, %v3689_v8 }
 0x3ff   :  { %v336_v18 = vpack.c.bf16 %v334_v16, %v334_v16  ;;  %3306 = vmatprep.subr.bf16.mxu1 %v3689_v8 }
 0x401   :  { %3291 = vmatmul.mubr.msk.bf16.vlgmr.msra.gmra.mrb[8].mxu0 %vm217_vm2, %v336_v18 }
 0x402   :  { %3301 = vmatpush3.bf16.xpose.msra.mxu0 %v495_v19  ;;  %3302 = vmatprep.mubr.msk.bf16.mxu0 %vm3690_vm0, %v3689_v8 }
 0x403   :  { %3312 = vmatprep.subr.bf16.mxu0 %v3689_v8 }
 0x405   :  { %3297 = vmatmul.mubr.msk.bf16.vlgmr.msra.gmra.mrb[8].mxu1 %vm217_vm2, %v437_v20 }
 0x406   :  { %3308 = vmatprep.mubr.msk.bf16.mxu1 %vm3690_vm0, %v3689_v8 }
 0x409   :  { %3303 = vmatmul.mubr.msk.bf16.vlgmr.msra.gmra.mrb[12].mxu0 %vm217_vm2, %v488_v21 }
 0x40a   :  { %3314 = vmatprep.mubr.msk.bf16.mxu0 %vm3690_vm0, %v3689_v8 }
 0x4d0   :  { %v3909_v22 = vpop.f32.mrb[4].mxu1 }
 0x4d1   :  { %v3286_v23 = vpop.f32.mrb[5].mxu1 }
 0x4d2   :  { %v383_v24 = vpop.f32.mrb[6].mxu1 }
 0x4d3   :  { %v3287_v25 = vpop.f32.mrb[7].mxu1 }
 0x4d4   :  { %v3911_v26 = vpop.f32.mrb[8].mxu0 }
 0x4d5   :  { %v434_v29 = vpack.c.bf16 %v3911_v26, %v3909_v22  ;;  %v3292_v30 = vpop.f32.mrb[9].mxu0 }
 0x4d6   :  { %v431_v31 = vpop.f32.mrb[10].mxu0 }
 0x4d7   :  { %v3293_v32 = vpop.f32.mrb[11].mxu0 }
 0x4d8   :  { %v480_v33 = vpop.f32.mrb[8].mxu1 }
 0x4d9   :  { %v3298_v34 = vpop.f32.mrb[9].mxu1  ;;  %v537_v36 = vsel %vm217_vm2, %v480_v33, -inf }
 0x4da   :  { %538 = vmax.xlane.f32.xlu0 %v537_v36  ;;  %v483_v37 = vpop.f32.mrb[10].mxu1 }
 0x4db   :  { %v3299_v39 = vpop.f32.mrb[11].mxu1 }
 0x4dc   :  { %v531_v40 = vpop.f32.mrb[12].mxu0 }
 0x4dd   :  { %v3304_v41 = vpop.f32.mrb[13].mxu0  ;;  %v540_v42 = vsel %vm217_vm2, %v531_v40, -inf }
 0x4de   :  { %541 = vmax.xlane.f32.xlu1 %v540_v42  ;;  %v534_v43 = vpop.f32.mrb[14].mxu0 }
 0x4df   :  { %v3305_v44 = vpop.f32.mrb[15].mxu0 }
 0x4ef   :  { %561 = vrot.lane.b32.xlu1 %v3849_v35, %s3695_s26 }
 0x4f3   :  { %754 = vrot.lane.b32.xlu1 %v3849_v35, %s3696_s28 }
 0x4f7   :  { %804 = vrot.lane.b32.xlu1 %v3851_v38, %s3696_s28 }
 0x4fb   :  { %802 = vrot.lane.b32.xlu1 %v3863_v46, %s3697_s29 }
 0x567   :  { %v539_v47 = vpop.xlane.xlu0 %538 }
 0x568   :  { %v543_v48 = vsub.f32 %v480_v33, %v539_v47 }
 0x56a   :  { %v545_v49 = vmul.f32 1.442695, %v543_v48 }
 0x56b   :  { %v542_v50 = vpop.xlane.xlu1 %541 }
 0x56c   :  { %3608 = vpow2.f32 %v545_v49  ;;  %v544_v51 = vsub.f32 %v531_v40, %v542_v50 }
 0x56e   :  { %v547_v52 = vmul.f32 1.442695, %v544_v51 }
 0x56f   :  { %v562_v53 = vpop.permute.xlu1 %561 }
 0x570   :  { %3610 = vpow2.f32 %v547_v52  ;;  %v567_v54 = vsel %vm342_vm3, %v562_v53, 0 }
 0x571   :  { %3307 = vmatpush3.bf16.msra.mxu1 %v567_v54 }
 0x572   :  { %3318 = vmatprep.subr.bf16.mxu1 %v3689_v8 }
 0x573   :  { %v755_v10 = vpop.permute.xlu1 %754 }
 0x574   :  { %v760_v22 = vsel %vm217_vm2, %v755_v10, 0 }
 0x576   :  { %v3609_v55 = vpop.eup %3608 }
 0x577   :  { %v549_v56 = vsel %vm217_vm2, %v3609_v55, 0.0  ;;  %v805_v11 = vpop.permute.xlu1 %804 }
 0x578   :  { %550 = vadd.xlane.f32.xlu0 %v549_v56  ;;  %v810_v12 = vsel %vm217_vm2, %v805_v11, 0  ;;  %v127_v11 = vld [vmem:[%s4406_s7 + $0x8] sm:$0xf] }
 0x57a   :  { %v3611_v57 = vpop.eup %3610 }
 0x57b   :  { %v552_v58 = vsel %vm217_vm2, %v3611_v57, 0.0  ;;  %v803_v13 = vpop.permute.xlu1 %802 }
 0x57c   :  { %553 = vadd.xlane.f32.xlu0 %v552_v58 }
 0x592   :  { %609 = vrot.lane.b32.xlu0 %v3851_v38, %s3695_s26 }
 0x596   :  { %752 = vrot.lane.b32.xlu0 %v3861_v45, %s3697_s29 }
 0x605   :  { %v551_v59 = vpop.xlane.xlu0 %550 }
 0x606   :  { %3612 = vrcp.f32 %v551_v59 }
 0x609   :  { %v554_v60 = vpop.xlane.xlu0 %553 }
 0x60a   :  { %3614 = vrcp.f32 %v554_v60 }
 0x60d   :  { %v610_v61 = vpop.permute.xlu0 %609 }
 0x60e   :  { %v615_v62 = vsel %vm342_vm3, %v610_v61, 0 }
 0x60f   :  { %3313 = vmatpush3.bf16.msra.mxu0 %v615_v62 }
 0x610   :  { %v3613_v63 = vpop.eup %3612  ;;  %3324 = vmatprep.subr.bf16.mxu0 %v3689_v8 }
 0x611   :  { %v557_v1 = vmul.f32 %v3613_v63, %v3609_v55  ;;  %v753_v26 = vpop.permute.xlu0 %752 }
 0x613   :  { %v559_v2 = vpack.c.bf16 %v557_v1, %v557_v1 }
 0x614   :  { %v3615_v4 = vpop.eup %3614 }
 0x615   :  { %v558_v6 = vmul.f32 %v3615_v4, %v3611_v57  ;;  %3309 = vmatmul.mubr.msk.bf16.vlgmr.msra.gmra.mrb[12].mxu1 %vm217_vm2, %v559_v2 }
 0x616   :  { %3319 = vmatpush3.bf16.msra.mxu1 %v662_v3  ;;  %3320 = vmatprep.mubr.msk.bf16.mxu1 %vm3690_vm0, %v3689_v8 }
 0x617   :  { %v560_v7 = vpack.c.bf16 %v558_v6, %v558_v6  ;;  %3330 = vmatprep.subr.bf16.mxu1 %v3689_v8 }
 0x619   :  { %3315 = vmatmul.mubr.msk.bf16.vlgmr.msra.gmra.mrb[16].mxu0 %vm217_vm2, %v560_v7 }
 0x61a   :  { %3325 = vmatpush3.bf16.msra.mxu0 %v709_v9  ;;  %3326 = vmatprep.mubr.msk.bf16.mxu0 %vm3690_vm0, %v3689_v8 }
 0x61b   :  { %3336 = vmatprep.subr.bf16.mxu0 %v3689_v8 }
 0x621   :  { %3327 = vmatmul.mubr.msk.bf16.vlgmr.msra.gmra.mrb[20].mxu0 %vm217_vm2, %v434_v29 }
 0x622   :  { %3338 = vmatprep.mubr.msk.bf16.mxu0 %vm3690_vm0, %v3689_v8 }
 0x623   :  { %3337 = vmatpush3.bf16.xpose.msra.mxu0 %v810_v12  ;;  %v977_v12 = vsel %vm342_vm3, %v127_v11, 0 }
 0x624   :  { %3348 = vmatprep.subr.bf16.mxu0 %v3689_v8 }
 0x62a   :  { %3339 = vmatmul.mubr.msk.bf16.vlgmr.msra.gmra.mrb[24].mxu0 %vm217_vm2, %v803_v13 }
 0x62b   :  { %3350 = vmatprep.mubr.msk.bf16.mxu0 %vm3690_vm0, %v3689_v8 }
 0x6e8   :  { %v603_v14 = vpop.f32.mrb[12].mxu1 }
 0x6e9   :  { %v3310_v15 = vpop.f32.mrb[13].mxu1 }
 0x6ea   :  { %v606_v16 = vpop.f32.mrb[14].mxu1 }
 0x6eb   :  { %v3311_v17 = vpop.f32.mrb[15].mxu1 }
 0x6ec   :  { %v651_v18 = vpop.f32.mrb[16].mxu0 }
 0x6ed   :  { %v657_v19 = vpack.c.bf16 %v651_v18, %v603_v14  ;;  %v3316_v20 = vpop.f32.mrb[17].mxu0 }
 0x6ee   :  { %v654_v21 = vpop.f32.mrb[18].mxu0 }
 0x6ef   :  { %v3317_v23 = vpop.f32.mrb[19].mxu0  ;;  %3321 = vmatmul.mubr.msk.bf16.vlgmr.msra.gmra.mrb[16].mxu1 %vm217_vm2, %v657_v19 }
 0x6f0   :  { %3331 = vmatpush3.bf16.xpose.msra.mxu1 %v760_v22  ;;  %3332 = vmatprep.mubr.msk.bf16.mxu1 %vm3690_vm0, %v3689_v8 }
 0x6f1   :  { %3342 = vmatprep.subr.bf16.mxu1 %v3689_v8 }
 0x6f4   :  { %v745_v24 = vpop.f32.mrb[20].mxu0 }
 0x6f5   :  { %v3328_v25 = vpop.f32.mrb[21].mxu0 }
 0x6f6   :  { %v748_v29 = vpop.f32.mrb[22].mxu0 }
 0x6f7   :  { %v3329_v30 = vpop.f32.mrb[23].mxu0  ;;  %3333 = vmatmul.mubr.msk.bf16.vlgmr.msra.gmra.mrb[20].mxu1 %vm217_vm2, %v753_v26 }
 0x6f8   :  { %3344 = vmatprep.mubr.msk.bf16.mxu1 %vm3690_vm0, %v3689_v8 }
 0x6fd   :  { %v846_v31 = vpop.f32.mrb[24].mxu0 }
 0x6fe   :  { %v3340_v32 = vpop.f32.mrb[25].mxu0  ;;  %v855_v33 = vsel %vm217_vm2, %v846_v31, -inf }
 0x6ff   :  { %856 = vmax.xlane.f32.xlu1 %v855_v33  ;;  %v849_v34 = vpop.f32.mrb[26].mxu0 }
 0x700   :  { %v3341_v36 = vpop.f32.mrb[27].mxu0 }
 0x710   :  { %876 = vrot.lane.b32.xlu1 %v3849_v35, %s3698_s1 }
 0x714   :  { %1024 = vrot.lane.b32.xlu1 %v3849_v35, %s3699_s22 }
 0x718   :  { %1074 = vrot.lane.b32.xlu1 %v3851_v38, %s3699_s22 }
 0x71c   :  { %1072 = vrot.lane.b32.xlu1 %v3863_v46, %s4424_s5 }
 0x78c   :  { %v857_v37 = vpop.xlane.xlu1 %856 }
 0x78d   :  { %v859_v41 = vsub.f32 %v846_v31, %v857_v37 }
 0x78f   :  { %v862_v42 = vmul.f32 1.442695, %v859_v41 }
 0x790   :  { %v877_v39 = vpop.permute.xlu1 %876 }
 0x791   :  { %v882_v40 = vsel %vm342_vm3, %v877_v39, 0  ;;  %3616 = vpow2.f32 %v862_v42 }
 0x792   :  { %3343 = vmatpush3.bf16.msra.mxu1 %v882_v40 }
 0x793   :  { %3354 = vmatprep.subr.bf16.mxu1 %v3689_v8 }
 0x79b   :  { %v3617_v53 = vpop.eup %3616 }
 0x79c   :  { %v867_v56 = vsel %vm217_vm2, %v3617_v53, 0.0 }
 0x7c2   :  { %v698_v43 = vpop.f32.mrb[16].mxu1 }
 0x7c3   :  { %v3981_v44 = vadd.f32 %v745_v24, %v698_v43  ;;  %v3322_v47 = vpop.f32.mrb[17].mxu1 }
 0x7c4   :  { %v701_v48 = vpop.f32.mrb[18].mxu1 }
 0x7c5   :  { %v3983_v49 = vadd.f32 %v748_v29, %v701_v48  ;;  %v3323_v50 = vpop.f32.mrb[19].mxu1 }
 0x7ca   :  { %v796_v51 = vpop.f32.mrb[20].mxu1 }
 0x7cb   :  { %v3334_v46 = vpop.f32.mrb[21].mxu1  ;;  %v852_v52 = vsel %vm217_vm2, %v796_v51, -inf }
 0x7cc   :  { %853 = vmax.xlane.f32.xlu0 %v852_v52  ;;  %v799_v54 = vpop.f32.mrb[22].mxu1 }
 0x7cd   :  { %v3335_v55 = vpop.f32.mrb[23].mxu1 }
 0x7d0   :  { %868 = vadd.xlane.f32.xlu0 %v867_v56 }
 0x859   :  { %v854_v57 = vpop.xlane.xlu0 %853 }
 0x85a   :  { %v858_v58 = vsub.f32 %v796_v51, %v854_v57 }
 0x85c   :  { %v860_v59 = vmul.f32 1.442695, %v858_v58 }
 0x85d   :  { %v869_v62 = vpop.xlane.xlu0 %868 }
 0x85e   :  { %3618 = vpow2.f32 %v860_v59 }
 0x85f   :  { %3620 = vrcp.f32 %v869_v62 }
 0x868   :  { %v3619_v60 = vpop.eup %3618 }
 0x869   :  { %v864_v61 = vsel %vm217_vm2, %v3619_v60, 0.0  ;;  %v3621_v63 = vpop.eup %3620 }
 0x86a   :  { %865 = vadd.xlane.f32.xlu0 %v864_v61  ;;  %v873_v1 = vmul.f32 %v3621_v63, %v3617_v53  ;;  %v128_v61 = vld [vmem:[%s4406_s7 + $0xc] sm:$0xf] }
 0x86b   :  { %v1247_v62 = vsel %vm342_vm3, %v128_v61, 0  ;;  %v3074_v61 = vld [vmem:[%s4412_s12] ss:$0 sm:$0xff] }
 0x86c   :  { %v875_v4 = vpack.c.bf16 %v873_v1, %v873_v1 }
 0x880   :  { %924 = vrot.lane.b32.xlu0 %v3851_v38, %s3698_s1 }
 0x884   :  { %1022 = vrot.lane.b32.xlu0 %v3861_v45, %s4424_s5  ;;  %v1025_v45 = vpop.permute.xlu1 %1024 }
 0x885   :  { %v1030_v7 = vsel %vm217_vm2, %v1025_v45, 0 }
 0x888   :  { %v1075_v17 = vpop.permute.xlu1 %1074 }
 0x889   :  { %v1080_v22 = vsel %vm217_vm2, %v1075_v17, 0 }
 0x88c   :  { %v1073_v31 = vpop.permute.xlu1 %1072 }
 0x8f7   :  { %v866_v0 = vpop.xlane.xlu0 %865 }
 0x8f8   :  { %3622 = vrcp.f32 %v866_v0 }
 0x8fb   :  { %v925_v2 = vpop.permute.xlu0 %924 }
 0x8fc   :  { %v930_v3 = vsel %vm342_vm3, %v925_v2, 0 }
 0x8fd   :  { %3349 = vmatpush3.bf16.msra.mxu0 %v930_v3 }
 0x8fe   :  { %3360 = vmatprep.subr.bf16.mxu0 %v3689_v8 }
 0x8ff   :  { %v1023_v10 = vpop.permute.xlu0 %1022 }
 0x900   :  { %3351 = vmatmul.mubr.msk.bf16.vlgmr.msra.gmra.mrb[28].mxu0 %vm217_vm2, %v875_v4 }
 0x901   :  { %3362 = vmatprep.mubr.msk.bf16.mxu0 %vm3690_vm0, %v3689_v8 }
 0x902   :  { %v3623_v5 = vpop.eup %3622 }
 0x903   :  { %v872_v6 = vmul.f32 %v3623_v5, %v3619_v60 }
 0x905   :  { %v874_v9 = vpack.c.bf16 %v872_v6, %v872_v6 }
 0x906   :  { %3361 = vmatpush3.bf16.xpose.msra.mxu0 %v1030_v7 }
 0x907   :  { %3345 = vmatmul.mubr.msk.bf16.vlgmr.msra.gmra.mrb[24].mxu1 %vm217_vm2, %v874_v9  ;;  %3372 = vmatprep.subr.bf16.mxu0 %v3689_v8 }
 0x908   :  { %3356 = vmatprep.mubr.msk.bf16.mxu1 %vm3690_vm0, %v3689_v8  ;;  %3355 = vmatpush3.bf16.msra.mxu1 %v977_v12 }
 0x909   :  { %3366 = vmatprep.subr.bf16.mxu1 %v3689_v8 }
 0x90d   :  { %3363 = vmatmul.mubr.msk.bf16.vlgmr.msra.gmra.mrb[32].mxu0 %vm217_vm2, %v1023_v10 }
 0x90e   :  { %3374 = vmatprep.mubr.msk.bf16.mxu0 %vm3690_vm0, %v3689_v8 }
 0x9d3   :  { %v966_v13 = vpop.f32.mrb[28].mxu0 }
 0x9d4   :  { %v3352_v14 = vpop.f32.mrb[29].mxu0 }
 0x9d5   :  { %v969_v15 = vpop.f32.mrb[30].mxu0 }
 0x9d6   :  { %v3353_v16 = vpop.f32.mrb[31].mxu0 }
 0x9da   :  { %v918_v18 = vpop.f32.mrb[24].mxu1 }
 0x9db   :  { %v972_v19 = vpack.c.bf16 %v966_v13, %v918_v18  ;;  %v3346_v20 = vpop.f32.mrb[25].mxu1  ;;  %v3071_v13 = vld [vmem:[%s4407_s8] ss:$0 sm:$0xff] }
 0x9dc   :  { %v921_v21 = vpop.f32.mrb[26].mxu1 }
 0x9dd   :  { %v3347_v23 = vpop.f32.mrb[27].mxu1  ;;  %3357 = vmatmul.mubr.msk.bf16.vlgmr.msra.gmra.mrb[28].mxu1 %vm217_vm2, %v972_v19 }
 0x9de   :  { %3367 = vmatpush3.bf16.xpose.msra.mxu1 %v1080_v22  ;;  %3368 = vmatprep.mubr.msk.bf16.mxu1 %vm3690_vm0, %v3689_v8 }
 0x9df   :  { %3378 = vmatprep.subr.bf16.mxu1 %v3689_v8 }
 0x9e0   :  { %v1066_v24 = vpop.f32.mrb[32].mxu0 }
 0x9e1   :  { %v3364_v25 = vpop.f32.mrb[33].mxu0  ;;  %v1122_v26 = vsel %vm217_vm2, %v1066_v24, -inf }
 0x9e2   :  { %1123 = vmax.xlane.f32.xlu0 %v1122_v26  ;;  %v1069_v29 = vpop.f32.mrb[34].mxu0 }
 0x9e3   :  { %v3365_v30 = vpop.f32.mrb[35].mxu0 }
 0x9e5   :  { %3369 = vmatmul.mubr.msk.bf16.vlgmr.msra.gmra.mrb[32].mxu1 %vm217_vm2, %v1073_v31 }
 0x9e6   :  { %3380 = vmatprep.mubr.msk.bf16.mxu1 %vm3690_vm0, %v3689_v8 }
 0xa6f   :  { %v1124_v32 = vpop.xlane.xlu0 %1123 }
 0xa70   :  { %v1128_v33 = vsub.f32 %v1066_v24, %v1124_v32 }
 0xa72   :  { %v1130_v34 = vmul.f32 1.442695, %v1128_v33 }
 0xa74   :  { %3624 = vpow2.f32 %v1130_v34 }
 0xa7e   :  { %v3625_v36 = vpop.eup %3624 }
 0xa7f   :  { %v1134_v37 = vsel %vm217_vm2, %v3625_v36, 0.0 }
 0xa80   :  { %1135 = vadd.xlane.f32.xlu0 %v1134_v37 }
 0xab0   :  { %v1013_v39 = vpop.f32.mrb[28].mxu1 }
 0xab1   :  { %v1020_v40 = vadd.f32 %v1013_v39, %v3981_v44  ;;  %v3358_v41 = vpop.f32.mrb[29].mxu1  ;;  %v3585_v39 = vld [vmem:[%s4408_s11 + $0x8] sm:$0xff]  }
 0xab2   :  { %v1016_v42 = vpop.f32.mrb[30].mxu1 }
 0xab3   :  { %v1021_v43 = vadd.f32 %v1016_v42, %v3983_v49  ;;  %v3359_v47 = vpop.f32.mrb[31].mxu1 }
 0xab8   :  { %v1116_v48 = vpop.f32.mrb[32].mxu1 }
 0xab9   :  { %v3370_v50 = vpop.f32.mrb[33].mxu1  ;;  %v1125_v51 = vsel %vm217_vm2, %v1116_v48, -inf }
 0xaba   :  { %1126 = vmax.xlane.f32.xlu1 %v1125_v51  ;;  %v1119_v46 = vpop.f32.mrb[34].mxu1  ;;  %v3072_v51 = vld [vmem:[%s4409_s9] ss:$0 sm:$0xff] }
 0xabb   :  { %v3371_v52 = vpop.f32.mrb[35].mxu1 }
 0xacb   :  { %1146 = vrot.lane.b32.xlu1 %v3849_v35, %s4422_s0 }
 0xb0d   :  { %v1136_v53 = vpop.xlane.xlu0 %1135 }
 0xb0e   :  { %3626 = vrcp.f32 %v1136_v53 }
 0xb18   :  { %v3627_v54 = vpop.eup %3626 }
 0xb19   :  { %v1142_v56 = vmul.f32 %v3627_v54, %v3625_v36 }
 0xb1b   :  { %v1144_v59 = vpack.c.bf16 %v1142_v56, %v1142_v56 }
 0xb47   :  { %v1127_v44 = vpop.xlane.xlu1 %1126 }
 0xb48   :  { %v1129_v55 = vsub.f32 %v1116_v48, %v1127_v44  ;;  %v3073_v44 = vld [vmem:[%s4410_s10] ss:$0 sm:$0xff] }
 0xb4a   :  { %v1132_v57 = vmul.f32 1.442695, %v1129_v55 }
 0xb4b   :  { %v1147_v49 = vpop.permute.xlu1 %1146 }
 0xb4c   :  { %3628 = vpow2.f32 %v1132_v57  ;;  %v1152_v58 = vsel %vm342_vm3, %v1147_v49, 0 }
 0xb4d   :  { %3373 = vmatpush3.bf16.msra.mxu0 %v1152_v58  ;;  %v3586_v58 = vld [vmem:[%s4411_s13] sm:$0xff]  }
 0xb4e   :  { %3384 = vmatprep.subr.bf16.mxu0 %v3689_v8 }
 0xb50   :  { %3375 = vmatmul.mubr.msk.bf16.vlgmr.msra.gmra.mrb[36].mxu0 %vm217_vm2, %v1144_v59  ;;  %v3587_v59 = vld [vmem:[%s4411_s13 + $0x8] sm:$0xff]  }
 0xb51   :  { %3386 = vmatprep.mubr.msk.bf16.mxu0 %vm3690_vm0, %v3689_v8  ;;  %3385 = vmatpush3.bf16.msra.mxu0 %v1247_v62 }
 0xb52   :  { %3398 = vmatprep.subr.bf16.mxu0 %v3689_v8 }
 0xb56   :  { %v3629_v35 = vpop.eup %3628 }
 0xb57   :  { %v1137_v60 = vsel %vm217_vm2, %v3629_v35, 0.0 }
 0xb58   :  { %1138 = vadd.xlane.f32.xlu0 %v1137_v60  ;;  %v3589_v60 = vld [vmem:[%s4411_s13 + $0x18] sm:$0xff]  }
 0xb6e   :  { %1194 = vrot.lane.b32.xlu0 %v3851_v38, %s4422_s0 }
 0xbe5   :  { %v1139_v63 = vpop.xlane.xlu0 %1138 }
 0xbe6   :  { %3630 = vrcp.f32 %v1139_v63 }
 0xbe9   :  { %v1195_v0 = vpop.permute.xlu0 %1194 }
 0xbea   :  { %v1200_v1 = vsel %vm342_vm3, %v1195_v0, 0 }
 0xbeb   :  { %3379 = vmatpush3.bf16.msra.mxu1 %v1200_v1 }
 0xbec   :  { %3390 = vmatprep.subr.bf16.mxu1 %v3689_v8 }
 0xbf0   :  { %v3631_v2 = vpop.eup %3630 }
 0xbf1   :  { %v1143_v3 = vmul.f32 %v3631_v2, %v3629_v35  ;;  %v3588_v35 = vld [vmem:[%s4411_s13 + $0x10] sm:$0xff]  }
 0xbf3   :  { %v1145_v38 = vpack.c.bf16 %v1143_v3, %v1143_v3 }
 0xbf5   :  { %3381 = vmatmul.mubr.msk.bf16.vlgmr.msra.gmra.mrb[36].mxu1 %vm217_vm2, %v1145_v38 }
 0xbf6   :  { %3394 = vmatprep.mubr.msk.bf16.mxu1 %vm3690_vm0, %v3689_v8 }
 0xc23   :  { %v1188_v4 = vpop.f32.mrb[36].mxu0 }
 0xc24   :  { %v3376_v5 = vpop.f32.mrb[37].mxu0 }
 0xc25   :  { %v1191_v45 = vpop.f32.mrb[38].mxu0 }
 0xc26   :  { %v3377_v6 = vpop.f32.mrb[39].mxu0 }
 0xcc8   :  { %v1236_v7 = vpop.f32.mrb[36].mxu1 }
 0xcc9   :  { %v1242_v9 = vpack.c.bf16 %v1236_v7, %v1188_v4  ;;  %v3382_v10 = vpop.f32.mrb[37].mxu1 }
 0xcca   :  { %v1239_v11 = vpop.f32.mrb[38].mxu1 }
 0xccb   :  { %v3383_v12 = vpop.f32.mrb[39].mxu1  ;;  %3387 = vmatmul.mubr.msk.bf16.vlgmr.msra.gmra.mrb[40].mxu0 %vm217_vm2, %v1242_v9 }
 0xccc   :  { %3406 = vmatprep.mubr.msk.bf16.mxu0 %vm3690_vm0, %v3689_v8  ;;  %3399 = vmatpush3.bf16.msra.mxu0 %v3586_v58 }
 0xccd   :  { %3400 = vmatprep.subr.bf16.mxu0 %v3689_v8 }
 0xcd0   :  { %3401 = vmatpush3.bf16.msra.mxu0 %v3587_v59 }
 0xcd1   :  { %3402 = vmatprep.subr.bf16.mxu0 %v3689_v8 }
 0xcd4   :  { %3403 = vmatpush3.bf16.msra.mxu0 %v3588_v35 }
 0xcd5   :  { %3404 = vmatprep.subr.bf16.mxu0 %v3689_v8 }
 0xcd8   :  { %3405 = vmatpush3.bf16.msra.mxu0 %v3589_v60 }
 0xcd9   :  { %3424 = vmatprep.subr.bf16.mxu0 %v3689_v8 }
 0xd9e   :  { %v1283_v14 = vpop.f32.mrb[40].mxu0 }
 0xd9f   :  { %v1290_v15 = vadd.f32 %v1283_v14, %v1020_v40  ;;  %v3388_v16 = vpop.f32.mrb[41].mxu0  ;;  %v3078_v14 = vld [vmem:[%s4413_s14] ss:$0 sm:$0xff] }
 0xda0   :  { %v1286_v17 = vpop.f32.mrb[42].mxu0 }
 0xda1   :  { %v1298_v18 = vadd.f32 %v3071_v13, %v1290_v15  ;;  %v1291_v19 = vadd.f32 %v1286_v17, %v1021_v43  ;;  %v3389_v20 = vpop.f32.mrb[43].mxu0 }
 0xda3   :  { %v1299_v21 = vadd.f32 %v3071_v13, %v1291_v19  ;;  %v1300_v22 = vadd.f32 %v1298_v18, %v3837_v27 }
 0xda5   :  { %v1304_v23 = vsel %vm163_vm1, %v1300_v22, 0.0  ;;  %v1301_v24 = vadd.f32 %v1299_v21, %v3839_v28  ;;  %v3584_v28 = vld [vmem:[%s4408_s11] sm:$0xff]  }
 0xda6   :  { %1305 = vadd.xlane.f32.xlu1 %v1304_v23  ;;  %3391 = vmatpush3.bf16.msra.mxu1 %v3584_v28  ;;  %v3591_v28 = vld [vmem:[%s4432_s27 + $0x18] sm:$0xff]  }
 0xda7   :  { %v1307_v25 = vsel %vm163_vm1, %v1301_v24, 0.0  ;;  %3392 = vmatprep.subr.bf16.mxu1 %v3689_v8 }
 0xda8   :  { %1308 = vadd.xlane.f32.xlu0 %v1307_v25 }
 0xdaa   :  { %3393 = vmatpush3.bf16.msra.mxu1 %v3585_v39 }
 0xdab   :  { %3410 = vmatprep.subr.bf16.mxu1 %v3689_v8 }
 0xe33   :  { %v1306_v26 = vpop.xlane.xlu1 %1305 }
 0xe34   :  { %v1311_v29 = vmul.f32 0.03125, %v1306_v26 }
 0xe35   :  { %v1309_v30 = vpop.xlane.xlu0 %1308 }
 0xe36   :  { %v1313_v31 = vsub.f32 %v1300_v22, %v1311_v29  ;;  %v1312_v32 = vmul.f32 0.03125, %v1309_v30 }
 0xe38   :  { %v1314_v33 = vsub.f32 %v1301_v24, %v1312_v32  ;;  %v1315_v34 = vmul.f32 %v1313_v31, %v1313_v31 }
 0xe3a   :  { %v1317_v36 = vsel %vm163_vm1, %v1315_v34, 0.0  ;;  %v1316_v37 = vmul.f32 %v1314_v33, %v1314_v33 }
 0xe3b   :  { %1318 = vadd.xlane.f32.xlu1 %v1317_v36 }
 0xe3c   :  { %v1320_v27 = vsel %vm163_vm1, %v1316_v37, 0.0 }
 0xe3d   :  { %1321 = vadd.xlane.f32.xlu0 %v1320_v27  ;;  %v3590_v27 = vld [vmem:[%s4432_s27 + $0x10] sm:$0xff]  }
 0xec8   :  { %v1319_v40 = vpop.xlane.xlu1 %1318 }
 0xec9   :  { %v1323_v41 = vmul.f32 0.03125, %v1319_v40 }
 0xeca   :  { %v1322_v42 = vpop.xlane.xlu0 %1321 }
 0xecb   :  { %v1325_v43 = vadd.f32 1e-05, %v1323_v41  ;;  %v1324_v47 = vmul.f32 0.03125, %v1322_v42 }
 0xecd   :  { %3632 = vrsqrt.f32 %v1325_v43  ;;  %v1326_v48 = vadd.f32 1e-05, %v1324_v47 }
 0xecf   :  { %3634 = vrsqrt.f32 %v1326_v48 }
 0xed7   :  { %v3633_v50 = vpop.eup %3632 }
 0xed8   :  { %v1329_v46 = vmul.f32 %v3633_v50, %v1313_v31  ;;  %v3084_v50 = vld [vmem:[%s4414_s15] ss:$0 sm:$0xff] }
 0xed9   :  { %v3635_v52 = vpop.eup %3634 }
 0xeda   :  { %v1337_v53 = vmul.f32 %v3072_v51, %v1329_v46  ;;  %v1330_v54 = vmul.f32 %v3635_v52, %v1314_v33 }
 0xedc   :  { %v1338_v55 = vmul.f32 %v3072_v51, %v1330_v54  ;;  %v1345_v56 = vadd.f32 %v3073_v44, %v1337_v53  ;;  %v3085_v54 = vld [vmem:[%s4415_s16] ss:$0 sm:$0xff] }
 0xede   :  { %v1346_v57 = vadd.f32 %v3073_v44, %v1338_v55 }
 0xee0   :  { %v1347_v49 = vpack.c.bf16 %v1346_v57, %v1345_v56 }
 0xee2   :  { %3395 = vmatmul.mubr.msk.bf16.vlgmr.msra.gmra.mrb[40].mxu1 %vm163_vm1, %v1347_v49  ;;  %v3110_v49 = vld [vmem:[%s4405_s6 + $0x1] ss:$0 sm:$0xff] }
 0xee3   :  { %3414 = vmatprep.mubr.msk.bf16.mxu1 %vm3690_vm0, %v3689_v8  ;;  %3411 = vmatpush3.bf16.msra.mxu1 %v3590_v27 }
 0xee4   :  { %3412 = vmatprep.subr.bf16.mxu1 %v3689_v8 }
 0xee7   :  { %3413 = vmatpush3.bf16.msra.mxu1 %v3591_v28 }
 0xee8   :  { %3418 = vmatprep.subr.bf16.mxu1 %v3689_v8 }
 0xfb5   :  { %v1403_v62 = vpop.f32.mrb[40].mxu1 }
 0xfb6   :  { %v1404_v63 = vadd.f32 %v3074_v61, %v1403_v62  ;;  %v3396_v0 = vpop.f32.mrb[41].mxu1 }
 0xfb7   :  { %v1406_v1 = vpop.f32.mrb[42].mxu1 }
 0xfb8   :  { %v1412_v2 = vmul.f32 0.70710677, %v1404_v63  ;;  %v1407_v3 = vadd.f32 %v3074_v61, %v1406_v1  ;;  %v3397_v38 = vpop.f32.mrb[43].mxu1  ;;  %v1410_v7 = vmul.f32 0.5, %v1404_v63 }
 0xfba   :  { %3636 = verf.f32 %v1412_v2  ;;  %v1413_v4 = vmul.f32 0.70710677, %v1407_v3  ;;  %v1411_v9 = vmul.f32 0.5, %v1407_v3 }
 0xfbc   :  { %3638 = verf.f32 %v1413_v4 }
 0xfc4   :  { %v3637_v5 = vpop.eup %3636 }
 0xfc5   :  { %v1416_v45 = vadd.f32 1.0, %v3637_v5 }
 0xfc6   :  { %v3639_v6 = vpop.eup %3638 }
 0xfc7   :  { %v1417_v10 = vadd.f32 1.0, %v3639_v6  ;;  %v1418_v11 = vmul.f32 %v1416_v45, %v1410_v7 }
 0xfc9   :  { %v1419_v12 = vmul.f32 %v1417_v10, %v1411_v9 }
 0xfcb   :  { %v1420_v13 = vpack.c.bf16 %v1419_v12, %v1418_v11 }
 0xfcd   :  { %3407 = vmatmul.mubr.msk.bf16.vlgmr.msra.gmra.mrb[44].mxu0 %vm1451_vm4, %v1420_v13 }
 0xfce   :  { %3426 = vmatprep.mubr.msk.bf16.mxu0 %vm3690_vm0, %v3689_v8 }
0x10a0   :  { %v1489_v15 = vpop.f32.mrb[44].mxu0 }
0x10a1   :  { %v1490_v16 = vadd.f32 %v3078_v14, %v1489_v15  ;;  %v3408_v17 = vpop.f32.mrb[45].mxu0 }
0x10a2   :  { %v1492_v18 = vpop.f32.mrb[46].mxu0 }
0x10a3   :  { %v1493_v19 = vadd.f32 %v3078_v14, %v1492_v18  ;;  %v3409_v20 = vpop.f32.mrb[47].mxu0  ;;  %v1496_v21 = vadd.f32 %v1490_v16, %v1345_v56 }
0x10a5   :  { %v1500_v22 = vsel %vm163_vm1, %v1496_v21, 0.0  ;;  %v1497_v23 = vadd.f32 %v1493_v19, %v1346_v57 }
0x10a6   :  { %1501 = vadd.xlane.f32.xlu1 %v1500_v22 }
0x10a7   :  { %v1503_v24 = vsel %vm163_vm1, %v1497_v23, 0.0 }
0x10a8   :  { %1504 = vadd.xlane.f32.xlu0 %v1503_v24 }
0x1133   :  { %v1502_v25 = vpop.xlane.xlu1 %1501 }
0x1134   :  { %v1506_v26 = vmul.f32 0.03125, %v1502_v25 }
0x1135   :  { %v1505_v29 = vpop.xlane.xlu0 %1504 }
0x1136   :  { %v1508_v30 = vsub.f32 %v1496_v21, %v1506_v26  ;;  %v1507_v31 = vmul.f32 0.03125, %v1505_v29 }
0x1138   :  { %v1509_v32 = vsub.f32 %v1497_v23, %v1507_v31  ;;  %v1510_v33 = vmul.f32 %v1508_v30, %v1508_v30 }
0x113a   :  { %v1512_v34 = vsel %vm163_vm1, %v1510_v33, 0.0  ;;  %v1511_v36 = vmul.f32 %v1509_v32, %v1509_v32 }
0x113b   :  { %1513 = vadd.xlane.f32.xlu1 %v1512_v34 }
0x113c   :  { %v1515_v37 = vsel %vm163_vm1, %v1511_v36, 0.0 }
0x113d   :  { %1516 = vadd.xlane.f32.xlu0 %v1515_v37 }
0x11c8   :  { %v1514_v39 = vpop.xlane.xlu1 %1513 }
0x11c9   :  { %v1518_v40 = vmul.f32 0.03125, %v1514_v39 }
0x11ca   :  { %v1517_v41 = vpop.xlane.xlu0 %1516 }
0x11cb   :  { %v1520_v42 = vadd.f32 1e-05, %v1518_v40  ;;  %v1519_v43 = vmul.f32 0.03125, %v1517_v41 }
0x11cd   :  { %3640 = vrsqrt.f32 %v1520_v42  ;;  %v1521_v47 = vadd.f32 1e-05, %v1519_v43 }
0x11cf   :  { %3642 = vrsqrt.f32 %v1521_v47 }
0x11d7   :  { %v3641_v48 = vpop.eup %3640 }
0x11d8   :  { %v1524_v51 = vmul.f32 %v3641_v48, %v1508_v30 }
0x11d9   :  { %v3643_v46 = vpop.eup %3642 }
0x11da   :  { %v1532_v52 = vmul.f32 %v3084_v50, %v1524_v51  ;;  %v1525_v53 = vmul.f32 %v3643_v46, %v1509_v32 }
0x11dc   :  { %v1533_v44 = vmul.f32 %v3084_v50, %v1525_v53  ;;  %v4115_v55 = vadd.f32 %v3085_v54, %v1532_v52 }
0x11de   :  { %v4117_v56 = vadd.f32 %v3085_v54, %v1533_v44 }
0x11e0   :  { %v1574_v57 = vpack.c.bf16 %v4117_v56, %v4115_v55 }
0x11e2   :  { %3415 = vmatmul.mubr.msk.bf16.vlgmr.msra.gmra.mrb[44].mxu1 %vm163_vm1, %v1574_v57 }
0x11e3   :  { %3420 = vmatprep.mubr.msk.bf16.mxu1 %vm3690_vm0, %v3689_v8 }
0x12b5   :  { %v1630_v58 = vpop.f32.mrb[44].mxu1 }
0x12b6   :  { %v1631_v59 = vadd.f32 %v3110_v49, %v1630_v58  ;;  %v3416_v35 = vpop.f32.mrb[45].mxu1 }
0x12b7   :  { %v1633_v60 = vpop.f32.mrb[46].mxu1 }
0x12b8   :  { %v4127_v61 = vpack.c.bf16 %v1631_v59, %v1631_v59  ;;  %v1634_v62 = vadd.f32 %v3110_v49, %v1633_v60  ;;  %v3417_v63 = vpop.f32.mrb[47].mxu1  ;;  %v1637_v38 = vmul.f32 0.35355338, %v1631_v59 }
0x12ba   :  { %v4129_v0 = vpack.c.bf16 %v1634_v62, %v1634_v62  ;;  %1644 = vrot.lane.b32.xlu1 %v4127_v61, %s3691_s23  ;;  %v1638_v5 = vmul.f32 0.35355338, %v1634_v62  ;;  %v4139_v45 = vpack.c.bf16 %v1637_v38, %v1637_v38 }
0x12bc   :  { %1693 = vrot.lane.b32.xlu0 %v4129_v0, %s3691_s23  ;;  %v4141_v6 = vpack.c.bf16 %v1638_v5, %v1638_v5 }
0x132c   :  { %v1645_v1 = vpop.permute.xlu1 %1644 }
0x132d   :  { %v1650_v2 = vsel %vm217_vm2, %v1645_v1, 0 }
0x132e   :  { %3419 = vmatpush3.bf16.xpose.msra.mxu1 %v1650_v2  ;;  %v1694_v3 = vpop.permute.xlu0 %1693 }
0x132f   :  { %v1699_v4 = vsel %vm217_vm2, %v1694_v3, 0  ;;  %3430 = vmatprep.subr.bf16.mxu1 %v3689_v8 }
0x1330   :  { %3425 = vmatpush3.bf16.xpose.msra.mxu0 %v1699_v4 }
0x1331   :  { %3436 = vmatprep.subr.bf16.mxu0 %v3689_v8 }
0x1335   :  { %3421 = vmatmul.mubr.msk.bf16.vlgmr.msra.gmra.mrb[48].mxu1 %vm217_vm2, %v4139_v45 }
0x1336   :  { %3432 = vmatprep.mubr.msk.bf16.mxu1 %vm3690_vm0, %v3689_v8 }
0x1337   :  { %3427 = vmatmul.mubr.msk.bf16.vlgmr.msra.gmra.mrb[48].mxu0 %vm217_vm2, %v4141_v6 }
0x1338   :  { %3438 = vmatprep.mubr.msk.bf16.mxu0 %vm3690_vm0, %v3689_v8 }
0x1408   :  { %v1686_v7 = vpop.f32.mrb[48].mxu1 }
0x1409   :  { %v3422_v9 = vpop.f32.mrb[49].mxu1  ;;  %v1741_v10 = vsel %vm217_vm2, %v1686_v7, -inf }
0x140a   :  { %1742 = vmax.xlane.f32.xlu1 %v1741_v10  ;;  %v1689_v11 = vpop.f32.mrb[50].mxu1  ;;  %v1735_v12 = vpop.f32.mrb[48].mxu0 }
0x140b   :  { %v3423_v13 = vpop.f32.mrb[51].mxu1  ;;  %v3428_v14 = vpop.f32.mrb[49].mxu0  ;;  %v1744_v15 = vsel %vm217_vm2, %v1735_v12, -inf }
0x140c   :  { %1745 = vmax.xlane.f32.xlu0 %v1744_v15  ;;  %v1738_v16 = vpop.f32.mrb[50].mxu0 }
0x140d   :  { %v3429_v17 = vpop.f32.mrb[51].mxu0 }
0x141b   :  { %1765 = vrot.lane.b32.xlu1 %v4127_v61, %s3692_s24 }
0x1497   :  { %v1743_v18 = vpop.xlane.xlu1 %1742 }
0x1498   :  { %v1747_v19 = vsub.f32 %v1686_v7, %v1743_v18 }
0x1499   :  { %v1746_v20 = vpop.xlane.xlu0 %1745 }
0x149a   :  { %v1749_v21 = vmul.f32 1.442695, %v1747_v19  ;;  %v1748_v22 = vsub.f32 %v1735_v12, %v1746_v20 }
0x149b   :  { %v1766_v23 = vpop.permute.xlu1 %1765 }
0x149c   :  { %3644 = vpow2.f32 %v1749_v21  ;;  %v1751_v24 = vmul.f32 1.442695, %v1748_v22  ;;  %v1771_v25 = vsel %vm342_vm3, %v1766_v23, 0 }
0x149d   :  { %3431 = vmatpush3.bf16.msra.mxu1 %v1771_v25  ;;  %v3092_v25 = vld [vmem:[%s4406_s7 + $0x14] sm:$0xf] }
0x149e   :  { %3646 = vpow2.f32 %v1751_v24  ;;  %3442 = vmatprep.subr.bf16.mxu1 %v3689_v8 }
0x14a6   :  { %v3645_v26 = vpop.eup %3644 }
0x14a7   :  { %v1753_v29 = vsel %vm217_vm2, %v3645_v26, 0.0 }
0x14a8   :  { %v3647_v30 = vpop.eup %3646  ;;  %1754 = vadd.xlane.f32.xlu1 %v1753_v29 }
0x14a9   :  { %v1756_v31 = vsel %vm217_vm2, %v3647_v30, 0.0 }
0x14aa   :  { %1757 = vadd.xlane.f32.xlu0 %v1756_v31 }
0x14b9   :  { %1865 = vrot.lane.b32.xlu1 %v4127_v61, %s3693_s25 }
0x14bd   :  { %1916 = vrot.lane.b32.xlu1 %v4129_v0, %s3693_s25 }
0x14c0   :  { %1813 = vrot.lane.b32.xlu0 %v4129_v0, %s3692_s24 }
0x14c1   :  { %1914 = vrot.lane.b32.xlu1 %v4141_v6, %s3694_s2 }
0x14c4   :  { %1863 = vrot.lane.b32.xlu0 %v4139_v45, %s3694_s2  ;;  %s4434_s2 = smov 104  }
0x1535   :  { %v1755_v32 = vpop.xlane.xlu1 %1754 }
0x1536   :  { %3648 = vrcp.f32 %v1755_v32  ;;  %v3091_v32 = vld [vmem:[%s4406_s7 + $0x10] sm:$0xf] }
0x1537   :  { %v1758_v33 = vpop.xlane.xlu0 %1757 }
0x1538   :  { %3650 = vrcp.f32 %v1758_v33 }
0x1539   :  { %v1866_v37 = vpop.permute.xlu1 %1865 }
0x153a   :  { %v1871_v43 = vsel %vm217_vm2, %v1866_v37, 0 }
0x153b   :  { %v1814_v34 = vpop.permute.xlu0 %1813 }
0x153c   :  { %v1819_v36 = vsel %vm342_vm3, %v1814_v34, 0 }
0x153d   :  { %3437 = vmatpush3.bf16.msra.mxu0 %v1819_v36  ;;  %v1917_v42 = vpop.permute.xlu1 %1916  ;;  %v2136_v36 = vsel %vm342_vm3, %v3091_v32, 0 }
0x153e   :  { %3448 = vmatprep.subr.bf16.mxu0 %v3689_v8  ;;  %v1922_v48 = vsel %vm217_vm2, %v1917_v42, 0 }
0x153f   :  { %v1864_v50 = vpop.permute.xlu0 %1863 }
0x1540   :  { %v3649_v27 = vpop.eup %3648 }
0x1541   :  { %v1761_v28 = vmul.f32 %v3649_v27, %v3645_v26  ;;  %v1915_v51 = vpop.permute.xlu1 %1914 }
0x1542   :  { %v3651_v39 = vpop.eup %3650 }
0x1543   :  { %v1762_v40 = vmul.f32 %v3651_v39, %v3647_v30  ;;  %v1763_v41 = vpack.c.bf16 %v1761_v28, %v1761_v28  ;;  %v2089_v30 = vsel %vm342_vm3, %v3092_v25, 0 }
0x1545   :  { %3433 = vmatmul.mubr.msk.bf16.vlgmr.msra.gmra.mrb[52].mxu1 %vm217_vm2, %v1763_v41  ;;  %v1764_v47 = vpack.c.bf16 %v1762_v40, %v1762_v40 }
0x1546   :  { %3443 = vmatpush3.bf16.xpose.msra.mxu1 %v1871_v43  ;;  %3444 = vmatprep.mubr.msk.bf16.mxu1 %vm3690_vm0, %v3689_v8 }
0x1547   :  { %3439 = vmatmul.mubr.msk.bf16.vlgmr.msra.gmra.mrb[52].mxu0 %vm217_vm2, %v1764_v47  ;;  %3454 = vmatprep.subr.bf16.mxu1 %v3689_v8 }
0x1548   :  { %3449 = vmatpush3.bf16.xpose.msra.mxu0 %v1922_v48  ;;  %3450 = vmatprep.mubr.msk.bf16.mxu0 %vm3690_vm0, %v3689_v8 }
0x1549   :  { %3460 = vmatprep.subr.bf16.mxu0 %v3689_v8 }
0x154d   :  { %3445 = vmatmul.mubr.msk.bf16.vlgmr.msra.gmra.mrb[56].mxu1 %vm217_vm2, %v1864_v50 }
0x154e   :  { %3456 = vmatprep.mubr.msk.bf16.mxu1 %vm3690_vm0, %v3689_v8 }
0x154f   :  { %3451 = vmatmul.mubr.msk.bf16.vlgmr.msra.gmra.mrb[56].mxu0 %vm217_vm2, %v1915_v51 }
0x1550   :  { %3462 = vmatprep.mubr.msk.bf16.mxu0 %vm3690_vm0, %v3689_v8 }
0x1618   :  { %v4187_v46 = vpop.f32.mrb[52].mxu1 }
0x1619   :  { %v3434_v52 = vpop.f32.mrb[53].mxu1 }
0x161a   :  { %v1810_v53 = vpop.f32.mrb[54].mxu1  ;;  %v4189_v54 = vpop.f32.mrb[52].mxu0 }
0x161b   :  { %v1861_v44 = vpack.c.bf16 %v4189_v54, %v4187_v46  ;;  %v3435_v57 = vpop.f32.mrb[55].mxu1  ;;  %v3440_v49 = vpop.f32.mrb[53].mxu0 }
0x161c   :  { %v1858_v58 = vpop.f32.mrb[54].mxu0 }
0x161d   :  { %v3441_v59 = vpop.f32.mrb[55].mxu0 }
0x1620   :  { %v1907_v35 = vpop.f32.mrb[56].mxu1 }
0x1621   :  { %v3446_v60 = vpop.f32.mrb[57].mxu1  ;;  %v1964_v62 = vsel %vm217_vm2, %v1907_v35, -inf }
0x1622   :  { %1965 = vmax.xlane.f32.xlu0 %v1964_v62  ;;  %v1910_v63 = vpop.f32.mrb[58].mxu1  ;;  %v1958_v1 = vpop.f32.mrb[56].mxu0 }
0x1623   :  { %v3447_v2 = vpop.f32.mrb[59].mxu1  ;;  %v3452_v3 = vpop.f32.mrb[57].mxu0  ;;  %v1967_v38 = vsel %vm217_vm2, %v1958_v1, -inf }
0x1624   :  { %1968 = vmax.xlane.f32.xlu1 %v1967_v38  ;;  %v1961_v4 = vpop.f32.mrb[58].mxu0 }
0x1625   :  { %v3453_v5 = vpop.f32.mrb[59].mxu0 }
0x1635   :  { %1988 = vrot.lane.b32.xlu1 %v4127_v61, %s3695_s26 }
0x1639   :  { %2181 = vrot.lane.b32.xlu1 %v4127_v61, %s3696_s28 }
0x163d   :  { %2231 = vrot.lane.b32.xlu1 %v4129_v0, %s3696_s28 }
0x1641   :  { %2229 = vrot.lane.b32.xlu1 %v4141_v6, %s3697_s29 }
0x16af   :  { %v1966_v7 = vpop.xlane.xlu0 %1965 }
0x16b0   :  { %v1970_v9 = vsub.f32 %v1907_v35, %v1966_v7 }
0x16b1   :  { %v1969_v10 = vpop.xlane.xlu1 %1968 }
0x16b2   :  { %v1972_v11 = vmul.f32 1.442695, %v1970_v9  ;;  %v1971_v12 = vsub.f32 %v1958_v1, %v1969_v10 }
0x16b4   :  { %3652 = vpow2.f32 %v1972_v11  ;;  %v1974_v13 = vmul.f32 1.442695, %v1971_v12 }
0x16b5   :  { %v1989_v14 = vpop.permute.xlu1 %1988 }
0x16b6   :  { %3654 = vpow2.f32 %v1974_v13  ;;  %v1994_v15 = vsel %vm342_vm3, %v1989_v14, 0 }
0x16b7   :  { %3455 = vmatpush3.bf16.msra.mxu1 %v1994_v15 }
0x16b8   :  { %3466 = vmatprep.subr.bf16.mxu1 %v3689_v8 }
0x16b9   :  { %v2182_v37 = vpop.permute.xlu1 %2181 }
0x16ba   :  { %v2187_v46 = vsel %vm217_vm2, %v2182_v37, 0 }
0x16bd   :  { %v2232_v27 = vpop.permute.xlu1 %2231 }
0x16be   :  { %v3653_v16 = vpop.eup %3652  ;;  %v2237_v28 = vsel %vm217_vm2, %v2232_v27, 0  ;;  %v3093_v27 = vld [vmem:[%s4406_s7 + $0x18] sm:$0xf] }
0x16bf   :  { %v1976_v17 = vsel %vm217_vm2, %v3653_v16, 0.0 }
0x16c0   :  { %v3655_v18 = vpop.eup %3654  ;;  %1977 = vadd.xlane.f32.xlu0 %v1976_v17 }
0x16c1   :  { %v1979_v19 = vsel %vm217_vm2, %v3655_v18, 0.0  ;;  %v2230_v39 = vpop.permute.xlu1 %2229 }
0x16c4   :  { %1980 = vadd.xlane.f32.xlu0 %v1979_v19 }
0x16da   :  { %2036 = vrot.lane.b32.xlu0 %v4129_v0, %s3695_s26 }
0x16de   :  { %2179 = vrot.lane.b32.xlu0 %v4139_v45, %s3697_s29  ;;  %s4435_s29 = smov 40  }
0x174d   :  { %v1978_v20 = vpop.xlane.xlu0 %1977 }
0x174e   :  { %3656 = vrcp.f32 %v1978_v20 }
0x1751   :  { %v1981_v21 = vpop.xlane.xlu0 %1980 }
0x1752   :  { %3658 = vrcp.f32 %v1981_v21 }
0x1755   :  { %v2037_v22 = vpop.permute.xlu0 %2036 }
0x1756   :  { %v2042_v23 = vsel %vm342_vm3, %v2037_v22, 0 }
0x1757   :  { %3461 = vmatpush3.bf16.msra.mxu0 %v2042_v23 }
0x1758   :  { %v3657_v24 = vpop.eup %3656  ;;  %3472 = vmatprep.subr.bf16.mxu0 %v3689_v8 }
0x1759   :  { %v1984_v26 = vmul.f32 %v3657_v24, %v3653_v16 }
0x175b   :  { %v1986_v29 = vpack.c.bf16 %v1984_v26, %v1984_v26 }
0x175c   :  { %v3659_v31 = vpop.eup %3658 }
0x175d   :  { %v1985_v33 = vmul.f32 %v3659_v31, %v3655_v18  ;;  %3457 = vmatmul.mubr.msk.bf16.vlgmr.msra.gmra.mrb[60].mxu1 %vm217_vm2, %v1986_v29 }
0x175e   :  { %3467 = vmatpush3.bf16.msra.mxu1 %v2089_v30  ;;  %3468 = vmatprep.mubr.msk.bf16.mxu1 %vm3690_vm0, %v3689_v8 }
0x175f   :  { %v1987_v34 = vpack.c.bf16 %v1985_v33, %v1985_v33  ;;  %3478 = vmatprep.subr.bf16.mxu1 %v3689_v8 }
0x1761   :  { %3463 = vmatmul.mubr.msk.bf16.vlgmr.msra.gmra.mrb[60].mxu0 %vm217_vm2, %v1987_v34 }
0x1762   :  { %3473 = vmatpush3.bf16.msra.mxu0 %v2136_v36  ;;  %3474 = vmatprep.mubr.msk.bf16.mxu0 %vm3690_vm0, %v3689_v8 }
0x1763   :  { %3484 = vmatprep.subr.bf16.mxu0 %v3689_v8 }
0x1769   :  { %3475 = vmatmul.mubr.msk.bf16.vlgmr.msra.gmra.mrb[64].mxu0 %vm217_vm2, %v1861_v44  ;;  %v2180_v44 = vpop.permute.xlu0 %2179 }
0x176a   :  { %3486 = vmatprep.mubr.msk.bf16.mxu0 %vm3690_vm0, %v3689_v8 }
0x176b   :  { %3485 = vmatpush3.bf16.xpose.msra.mxu0 %v2237_v28  ;;  %v2404_v28 = vsel %vm342_vm3, %v3093_v27, 0 }
0x176c   :  { %3496 = vmatprep.subr.bf16.mxu0 %v3689_v8 }
0x1772   :  { %3487 = vmatmul.mubr.msk.bf16.vlgmr.msra.gmra.mrb[68].mxu0 %vm217_vm2, %v2230_v39 }
0x1773   :  { %3498 = vmatprep.mubr.msk.bf16.mxu0 %vm3690_vm0, %v3689_v8 }
0x1830   :  { %v2030_v40 = vpop.f32.mrb[60].mxu1 }
0x1831   :  { %v3458_v41 = vpop.f32.mrb[61].mxu1 }
0x1832   :  { %v2033_v42 = vpop.f32.mrb[62].mxu1 }
0x1833   :  { %v3459_v43 = vpop.f32.mrb[63].mxu1 }
0x1834   :  { %v2078_v47 = vpop.f32.mrb[60].mxu0 }
0x1835   :  { %v2084_v48 = vpack.c.bf16 %v2078_v47, %v2030_v40  ;;  %v3464_v50 = vpop.f32.mrb[61].mxu0 }
0x1836   :  { %v2081_v51 = vpop.f32.mrb[62].mxu0 }
0x1837   :  { %v3465_v52 = vpop.f32.mrb[63].mxu0  ;;  %3469 = vmatmul.mubr.msk.bf16.vlgmr.msra.gmra.mrb[64].mxu1 %vm217_vm2, %v2084_v48 }
0x1838   :  { %3479 = vmatpush3.bf16.xpose.msra.mxu1 %v2187_v46  ;;  %3480 = vmatprep.mubr.msk.bf16.mxu1 %vm3690_vm0, %v3689_v8 }
0x1839   :  { %3490 = vmatprep.subr.bf16.mxu1 %v3689_v8 }
0x183c   :  { %v2172_v53 = vpop.f32.mrb[64].mxu0 }
0x183d   :  { %v3476_v54 = vpop.f32.mrb[65].mxu0 }
0x183e   :  { %v2175_v57 = vpop.f32.mrb[66].mxu0 }
0x183f   :  { %v3477_v49 = vpop.f32.mrb[67].mxu0  ;;  %3481 = vmatmul.mubr.msk.bf16.vlgmr.msra.gmra.mrb[68].mxu1 %vm217_vm2, %v2180_v44 }
0x1840   :  { %3492 = vmatprep.mubr.msk.bf16.mxu1 %vm3690_vm0, %v3689_v8 }
0x1845   :  { %v2273_v58 = vpop.f32.mrb[68].mxu0 }
0x1846   :  { %v3488_v59 = vpop.f32.mrb[69].mxu0  ;;  %v2282_v35 = vsel %vm217_vm2, %v2273_v58, -inf }
0x1847   :  { %2283 = vmax.xlane.f32.xlu1 %v2282_v35  ;;  %v2276_v60 = vpop.f32.mrb[70].mxu0 }
0x1848   :  { %v3489_v62 = vpop.f32.mrb[71].mxu0 }
0x1858   :  { %2303 = vrot.lane.b32.xlu1 %v4127_v61, %s3698_s1 }
0x185c   :  { %2451 = vrot.lane.b32.xlu1 %v4127_v61, %s3699_s22 }
0x1860   :  { %2501 = vrot.lane.b32.xlu1 %v4129_v0, %s3699_s22 }
0x1864   :  { %2499 = vrot.lane.b32.xlu1 %v4141_v6, %s4434_s2 }
0x18d4   :  { %v2284_v63 = vpop.xlane.xlu1 %2283 }
0x18d5   :  { %v2286_v3 = vsub.f32 %v2273_v58, %v2284_v63 }
0x18d7   :  { %v2289_v38 = vmul.f32 1.442695, %v2286_v3 }
0x18d8   :  { %v2304_v1 = vpop.permute.xlu1 %2303 }
0x18d9   :  { %v2309_v2 = vsel %vm342_vm3, %v2304_v1, 0  ;;  %3660 = vpow2.f32 %v2289_v38 }
0x18da   :  { %3491 = vmatpush3.bf16.msra.mxu1 %v2309_v2 }
0x18db   :  { %3502 = vmatprep.subr.bf16.mxu1 %v3689_v8 }
0x18e3   :  { %v3661_v14 = vpop.eup %3660 }
0x18e4   :  { %v2294_v17 = vsel %vm217_vm2, %v3661_v14, 0.0 }
0x190a   :  { %v2125_v4 = vpop.f32.mrb[64].mxu1 }
0x190b   :  { %v4259_v5 = vadd.f32 %v2172_v53, %v2125_v4  ;;  %v3470_v7 = vpop.f32.mrb[65].mxu1 }
0x190c   :  { %v2128_v9 = vpop.f32.mrb[66].mxu1 }
0x190d   :  { %v4261_v10 = vadd.f32 %v2175_v57, %v2128_v9  ;;  %v3471_v11 = vpop.f32.mrb[67].mxu1 }
0x1912   :  { %v2223_v12 = vpop.f32.mrb[68].mxu1 }
0x1913   :  { %v3482_v6 = vpop.f32.mrb[69].mxu1  ;;  %v2279_v13 = vsel %vm217_vm2, %v2223_v12, -inf }
0x1914   :  { %2280 = vmax.xlane.f32.xlu0 %v2279_v13  ;;  %v2226_v15 = vpop.f32.mrb[70].mxu1 }
0x1915   :  { %v3483_v16 = vpop.f32.mrb[71].mxu1 }
0x1918   :  { %2295 = vadd.xlane.f32.xlu0 %v2294_v17 }
0x19a1   :  { %v2281_v18 = vpop.xlane.xlu0 %2280 }
0x19a2   :  { %v2285_v19 = vsub.f32 %v2223_v12, %v2281_v18 }
0x19a4   :  { %v2287_v20 = vmul.f32 1.442695, %v2285_v19 }
0x19a5   :  { %v2296_v23 = vpop.xlane.xlu0 %2295 }
0x19a6   :  { %3662 = vpow2.f32 %v2287_v20 }
0x19a7   :  { %3664 = vrcp.f32 %v2296_v23 }
0x19b0   :  { %v3663_v21 = vpop.eup %3662 }
0x19b1   :  { %v2291_v22 = vsel %vm217_vm2, %v3663_v21, 0.0  ;;  %v3665_v24 = vpop.eup %3664 }
0x19b2   :  { %2292 = vadd.xlane.f32.xlu0 %v2291_v22  ;;  %v2300_v26 = vmul.f32 %v3665_v24, %v3661_v14  ;;  %v3094_v22 = vld [vmem:[%s4406_s7 + $0x1c] sm:$0xf] }
0x19b3   :  { %v2674_v23 = vsel %vm342_vm3, %v3094_v22, 0  ;;  %v3139_v22 = vld [vmem:[%s4412_s12 + $0x1] ss:$0 sm:$0xff] }
0x19b4   :  { %v2302_v31 = vpack.c.bf16 %v2300_v26, %v2300_v26 }
0x19c8   :  { %2351 = vrot.lane.b32.xlu0 %v4129_v0, %s3698_s1 }
0x19cc   :  { %2449 = vrot.lane.b32.xlu0 %v4139_v45, %s4434_s2  ;;  %v2452_v45 = vpop.permute.xlu1 %2451 }
0x19cd   :  { %v2457_v34 = vsel %vm217_vm2, %v2452_v45, 0 }
0x19d0   :  { %v2502_v43 = vpop.permute.xlu1 %2501 }
0x19d1   :  { %v2507_v46 = vsel %vm217_vm2, %v2502_v43, 0 }
0x19d4   :  { %v2500_v58 = vpop.permute.xlu1 %2499 }
0x1a3f   :  { %v2293_v25 = vpop.xlane.xlu0 %2292 }
0x1a40   :  { %3666 = vrcp.f32 %v2293_v25 }
0x1a43   :  { %v2352_v29 = vpop.permute.xlu0 %2351 }
0x1a44   :  { %v2357_v30 = vsel %vm342_vm3, %v2352_v29, 0 }
0x1a45   :  { %3497 = vmatpush3.bf16.msra.mxu0 %v2357_v30 }
0x1a46   :  { %3508 = vmatprep.subr.bf16.mxu0 %v3689_v8 }
0x1a47   :  { %v2450_v37 = vpop.permute.xlu0 %2449 }
0x1a48   :  { %3499 = vmatmul.mubr.msk.bf16.vlgmr.msra.gmra.mrb[72].mxu0 %vm217_vm2, %v2302_v31 }
0x1a49   :  { %3510 = vmatprep.mubr.msk.bf16.mxu0 %vm3690_vm0, %v3689_v8 }
0x1a4a   :  { %v3667_v32 = vpop.eup %3666 }
0x1a4b   :  { %v2299_v33 = vmul.f32 %v3667_v32, %v3663_v21 }
0x1a4d   :  { %v2301_v36 = vpack.c.bf16 %v2299_v33, %v2299_v33 }
0x1a4e   :  { %3509 = vmatpush3.bf16.xpose.msra.mxu0 %v2457_v34 }
0x1a4f   :  { %3493 = vmatmul.mubr.msk.bf16.vlgmr.msra.gmra.mrb[72].mxu1 %vm217_vm2, %v2301_v36  ;;  %3520 = vmatprep.subr.bf16.mxu0 %v3689_v8 }
0x1a50   :  { %3504 = vmatprep.mubr.msk.bf16.mxu1 %vm3690_vm0, %v3689_v8  ;;  %3503 = vmatpush3.bf16.msra.mxu1 %v2404_v28 }
0x1a51   :  { %3514 = vmatprep.subr.bf16.mxu1 %v3689_v8 }
0x1a55   :  { %3511 = vmatmul.mubr.msk.bf16.vlgmr.msra.gmra.mrb[76].mxu0 %vm217_vm2, %v2450_v37 }
0x1a56   :  { %3522 = vmatprep.mubr.msk.bf16.mxu0 %vm3690_vm0, %v3689_v8 }
0x1b1b   :  { %v2393_v39 = vpop.f32.mrb[72].mxu0 }
0x1b1c   :  { %v3500_v40 = vpop.f32.mrb[73].mxu0 }
0x1b1d   :  { %v2396_v41 = vpop.f32.mrb[74].mxu0 }
0x1b1e   :  { %v3501_v42 = vpop.f32.mrb[75].mxu0 }
0x1b22   :  { %v2345_v47 = vpop.f32.mrb[72].mxu1 }
0x1b23   :  { %v2399_v48 = vpack.c.bf16 %v2393_v39, %v2345_v47  ;;  %v3494_v50 = vpop.f32.mrb[73].mxu1  ;;  %v3134_v39 = vld [vmem:[%s4407_s8 + $0x1] ss:$0 sm:$0xff] }
0x1b24   :  { %v2348_v51 = vpop.f32.mrb[74].mxu1 }
0x1b25   :  { %v3495_v52 = vpop.f32.mrb[75].mxu1  ;;  %3505 = vmatmul.mubr.msk.bf16.vlgmr.msra.gmra.mrb[76].mxu1 %vm217_vm2, %v2399_v48 }
0x1b26   :  { %3515 = vmatpush3.bf16.xpose.msra.mxu1 %v2507_v46  ;;  %3516 = vmatprep.mubr.msk.bf16.mxu1 %vm3690_vm0, %v3689_v8 }
0x1b27   :  { %3526 = vmatprep.subr.bf16.mxu1 %v3689_v8 }
0x1b28   :  { %v2493_v53 = vpop.f32.mrb[76].mxu0 }
0x1b29   :  { %v3512_v54 = vpop.f32.mrb[77].mxu0  ;;  %v2549_v44 = vsel %vm217_vm2, %v2493_v53, -inf }
0x1b2a   :  { %2550 = vmax.xlane.f32.xlu0 %v2549_v44  ;;  %v2496_v57 = vpop.f32.mrb[78].mxu0 }
0x1b2b   :  { %v3513_v49 = vpop.f32.mrb[79].mxu0 }
0x1b2d   :  { %3517 = vmatmul.mubr.msk.bf16.vlgmr.msra.gmra.mrb[80].mxu1 %vm217_vm2, %v2500_v58 }
0x1b2e   :  { %3528 = vmatprep.mubr.msk.bf16.mxu1 %vm3690_vm0, %v3689_v8 }
0x1bb7   :  { %v2551_v59 = vpop.xlane.xlu0 %2550 }
0x1bb8   :  { %v2555_v35 = vsub.f32 %v2493_v53, %v2551_v59 }
0x1bba   :  { %v2557_v60 = vmul.f32 1.442695, %v2555_v35 }
0x1bbc   :  { %3668 = vpow2.f32 %v2557_v60 }
0x1bc6   :  { %v3669_v62 = vpop.eup %3668 }
0x1bc7   :  { %v2561_v63 = vsel %vm217_vm2, %v3669_v62, 0.0 }
0x1bc8   :  { %2562 = vadd.xlane.f32.xlu0 %v2561_v63 }
0x1bf8   :  { %v2440_v1 = vpop.f32.mrb[76].mxu1 }
0x1bf9   :  { %v2447_v2 = vadd.f32 %v2440_v1, %v4259_v5  ;;  %v3506_v3 = vpop.f32.mrb[77].mxu1  ;;  %v3593_v1 = vld [vmem:[%s4408_s11 + $0x18] sm:$0xff]  }
0x1bfa   :  { %v2443_v38 = vpop.f32.mrb[78].mxu1 }
0x1bfb   :  { %v2448_v4 = vadd.f32 %v2443_v38, %v4261_v10  ;;  %v3507_v7 = vpop.f32.mrb[79].mxu1 }
0x1c00   :  { %v2543_v9 = vpop.f32.mrb[80].mxu1 }
0x1c01   :  { %v3518_v11 = vpop.f32.mrb[81].mxu1  ;;  %v2552_v12 = vsel %vm217_vm2, %v2543_v9, -inf }
0x1c02   :  { %2553 = vmax.xlane.f32.xlu1 %v2552_v12  ;;  %v2546_v6 = vpop.f32.mrb[82].mxu1  ;;  %v3137_v12 = vld [vmem:[%s4409_s9 + $0x1] ss:$0 sm:$0xff] }
0x1c03   :  { %v3519_v13 = vpop.f32.mrb[83].mxu1 }
0x1c13   :  { %2573 = vrot.lane.b32.xlu1 %v4127_v61, %s4435_s29 }
0x1c55   :  { %v2563_v14 = vpop.xlane.xlu0 %2562 }
0x1c56   :  { %3670 = vrcp.f32 %v2563_v14 }
0x1c60   :  { %v3671_v15 = vpop.eup %3670 }
0x1c61   :  { %v2569_v17 = vmul.f32 %v3671_v15, %v3669_v62 }
0x1c63   :  { %v2571_v20 = vpack.c.bf16 %v2569_v17, %v2569_v17 }
0x1c8f   :  { %v2554_v16 = vpop.xlane.xlu1 %2553 }
0x1c90   :  { %v2556_v5 = vsub.f32 %v2543_v9, %v2554_v16  ;;  %v3138_v16 = vld [vmem:[%s4410_s10 + $0x1] ss:$0 sm:$0xff] }
0x1c92   :  { %v2559_v18 = vmul.f32 1.442695, %v2556_v5 }
0x1c93   :  { %v2574_v19 = vpop.permute.xlu1 %2573 }
0x1c94   :  { %3672 = vpow2.f32 %v2559_v18  ;;  %v2579_v10 = vsel %vm342_vm3, %v2574_v19, 0 }
0x1c95   :  { %3521 = vmatpush3.bf16.msra.mxu0 %v2579_v10  ;;  %v3594_v10 = vld [vmem:[%s4411_s13 + $0x20] sm:$0xff]  }
0x1c96   :  { %3532 = vmatprep.subr.bf16.mxu0 %v3689_v8 }
0x1c98   :  { %3523 = vmatmul.mubr.msk.bf16.vlgmr.msra.gmra.mrb[80].mxu0 %vm217_vm2, %v2571_v20  ;;  %v3595_v20 = vld [vmem:[%s4411_s13 + $0x28] sm:$0xff]  }
0x1c99   :  { %3534 = vmatprep.mubr.msk.bf16.mxu0 %vm3690_vm0, %v3689_v8  ;;  %3533 = vmatpush3.bf16.msra.mxu0 %v2674_v23 }
0x1c9a   :  { %3546 = vmatprep.subr.bf16.mxu0 %v3689_v8 }
0x1c9e   :  { %v3673_v61 = vpop.eup %3672 }
0x1c9f   :  { %v2564_v21 = vsel %vm217_vm2, %v3673_v61, 0.0 }
0x1ca0   :  { %2565 = vadd.xlane.f32.xlu0 %v2564_v21  ;;  %v3597_v21 = vld [vmem:[%s4411_s13 + $0x38] sm:$0xff]  }
0x1cb6   :  { %2621 = vrot.lane.b32.xlu0 %v4129_v0, %s4435_s29 }
0x1d2d   :  { %v2566_v24 = vpop.xlane.xlu0 %2565 }
0x1d2e   :  { %3674 = vrcp.f32 %v2566_v24 }
0x1d31   :  { %v2622_v25 = vpop.permute.xlu0 %2621 }
0x1d32   :  { %v2627_v26 = vsel %vm342_vm3, %v2622_v25, 0 }
0x1d33   :  { %3527 = vmatpush3.bf16.msra.mxu1 %v2627_v26 }
0x1d34   :  { %3538 = vmatprep.subr.bf16.mxu1 %v3689_v8 }
0x1d38   :  { %v3675_v29 = vpop.eup %3674 }
0x1d39   :  { %v2570_v30 = vmul.f32 %v3675_v29, %v3673_v61  ;;  %v3596_v61 = vld [vmem:[%s4411_s13 + $0x30] sm:$0xff]  }
0x1d3b   :  { %v2572_v0 = vpack.c.bf16 %v2570_v30, %v2570_v30 }
0x1d3d   :  { %3529 = vmatmul.mubr.msk.bf16.vlgmr.msra.gmra.mrb[84].mxu1 %vm217_vm2, %v2572_v0 }
0x1d3e   :  { %3542 = vmatprep.mubr.msk.bf16.mxu1 %vm3690_vm0, %v3689_v8 }
0x1d6b   :  { %v2615_v31 = vpop.f32.mrb[80].mxu0 }
0x1d6c   :  { %v3524_v32 = vpop.f32.mrb[81].mxu0 }
0x1d6d   :  { %v2618_v45 = vpop.f32.mrb[82].mxu0 }
0x1d6e   :  { %v3525_v33 = vpop.f32.mrb[83].mxu0 }
0x1e10   :  { %v2663_v34 = vpop.f32.mrb[84].mxu1 }
0x1e11   :  { %v2669_v36 = vpack.c.bf16 %v2663_v34, %v2615_v31  ;;  %v3530_v37 = vpop.f32.mrb[85].mxu1 }
0x1e12   :  { %v2666_v27 = vpop.f32.mrb[86].mxu1 }
0x1e13   :  { %v3531_v28 = vpop.f32.mrb[87].mxu1  ;;  %3535 = vmatmul.mubr.msk.bf16.vlgmr.msra.gmra.mrb[84].mxu0 %vm217_vm2, %v2669_v36 }
0x1e14   :  { %3554 = vmatprep.mubr.msk.bf16.mxu0 %vm3690_vm0, %v3689_v8  ;;  %3547 = vmatpush3.bf16.msra.mxu0 %v3594_v10 }
0x1e15   :  { %3548 = vmatprep.subr.bf16.mxu0 %v3689_v8 }
0x1e18   :  { %3549 = vmatpush3.bf16.msra.mxu0 %v3595_v20 }
0x1e19   :  { %3550 = vmatprep.subr.bf16.mxu0 %v3689_v8 }
0x1e1c   :  { %3551 = vmatpush3.bf16.msra.mxu0 %v3596_v61 }
0x1e1d   :  { %3552 = vmatprep.subr.bf16.mxu0 %v3689_v8 }
0x1e20   :  { %3553 = vmatpush3.bf16.msra.mxu0 %v3597_v21 }
0x1ee6   :  { %v2710_v40 = vpop.f32.mrb[84].mxu0 }
0x1ee7   :  { %v2717_v41 = vadd.f32 %v2710_v40, %v2447_v2  ;;  %v3536_v42 = vpop.f32.mrb[85].mxu0  ;;  %v3143_v40 = vld [vmem:[%s4413_s14 + $0x1] ss:$0 sm:$0xff] }
0x1ee8   :  { %v2713_v43 = vpop.f32.mrb[86].mxu0 }
0x1ee9   :  { %v2725_v47 = vadd.f32 %v3134_v39, %v2717_v41  ;;  %v2718_v48 = vadd.f32 %v2713_v43, %v2448_v4  ;;  %v3537_v50 = vpop.f32.mrb[87].mxu0 }
0x1eeb   :  { %v2726_v51 = vadd.f32 %v3134_v39, %v2718_v48  ;;  %v2727_v46 = vadd.f32 %v2725_v47, %v4115_v55 }
0x1eed   :  { %v2733_v52 = vsel %vm163_vm1, %v2727_v46, 0.0  ;;  %v2728_v53 = vadd.f32 %v2726_v51, %v4117_v56  ;;  %v3592_v56 = vld [vmem:[%s4408_s11 + $0x10] sm:$0xff]  }
0x1eee   :  { %2734 = vadd.xlane.f32.xlu1 %v2733_v52  ;;  %3539 = vmatpush3.bf16.msra.mxu1 %v3592_v56  ;;  %v3599_v56 = vld [vmem:[%s4416_s17 + $0x8] sm:$0xff]  }
0x1eef   :  { %v2736_v54 = vsel %vm163_vm1, %v2728_v53, 0.0  ;;  %3540 = vmatprep.subr.bf16.mxu1 %v3689_v8 }
0x1ef0   :  { %2737 = vadd.xlane.f32.xlu0 %v2736_v54 }
0x1ef2   :  { %3541 = vmatpush3.bf16.msra.mxu1 %v3593_v1  ;;  %v24_v1 = vstv %s4417_s18 }
0x1ef3   :  { %3558 = vmatprep.subr.bf16.mxu1 %v3689_v8  ;;  %25 = vst [vmem:[#allocation2] sm:$0x1] %v24_v1 }
0x1f7b   :  { %v2735_v44 = vpop.xlane.xlu1 %2734 }
0x1f7c   :  { %v2739_v57 = vmul.f32 0.03125, %v2735_v44 }
0x1f7d   :  { %v2738_v49 = vpop.xlane.xlu0 %2737 }
0x1f7e   :  { %v2741_v58 = vsub.f32 %v2727_v46, %v2739_v57  ;;  %v2740_v59 = vmul.f32 0.03125, %v2738_v49 }
0x1f80   :  { %v2742_v35 = vsub.f32 %v2728_v53, %v2740_v59  ;;  %v2743_v60 = vmul.f32 %v2741_v58, %v2741_v58 }
0x1f82   :  { %v2745_v62 = vsel %vm163_vm1, %v2743_v60, 0.0  ;;  %v2744_v63 = vmul.f32 %v2742_v35, %v2742_v35 }
0x1f83   :  { %2746 = vadd.xlane.f32.xlu1 %v2745_v62 }
0x1f84   :  { %v2748_v55 = vsel %vm163_vm1, %v2744_v63, 0.0 }
0x1f85   :  { %2749 = vadd.xlane.f32.xlu0 %v2748_v55  ;;  %v3598_v55 = vld [vmem:[%s4416_s17] sm:$0xff]  }
0x2010   :  { %v2747_v2 = vpop.xlane.xlu1 %2746 }
0x2011   :  { %v2751_v3 = vmul.f32 0.03125, %v2747_v2 }
0x2012   :  { %v2750_v38 = vpop.xlane.xlu0 %2749 }
0x2013   :  { %v2753_v4 = vadd.f32 1e-05, %v2751_v3  ;;  %v2752_v7 = vmul.f32 0.03125, %v2750_v38 }
0x2015   :  { %3676 = vrsqrt.f32 %v2753_v4  ;;  %v2754_v9 = vadd.f32 1e-05, %v2752_v7 }
0x2017   :  { %3678 = vrsqrt.f32 %v2754_v9 }
0x201f   :  { %v3677_v11 = vpop.eup %3676 }
0x2020   :  { %v2757_v6 = vmul.f32 %v3677_v11, %v2741_v58 }
0x2021   :  { %v3679_v13 = vpop.eup %3678 }
0x2022   :  { %v2765_v14 = vmul.f32 %v3137_v12, %v2757_v6  ;;  %v2758_v15 = vmul.f32 %v3679_v13, %v2742_v35 }
0x2024   :  { %v2766_v5 = vmul.f32 %v3137_v12, %v2758_v15  ;;  %v2773_v17 = vadd.f32 %v3138_v16, %v2765_v14  ;;  %v3151_v12 = vld [vmem:[%s4414_s15 + $0x1] ss:$0 sm:$0xff] }
0x2025   :  { %v3152_v15 = vld [vmem:[%s4415_s16 + $0x1] ss:$0 sm:$0xff] }
0x2026   :  { %v2774_v18 = vadd.f32 %v3138_v16, %v2766_v5 }
0x2028   :  { %v2775_v19 = vpack.c.bf16 %v2774_v18, %v2773_v17 }
0x202a   :  { %3543 = vmatmul.mubr.msk.bf16.vlgmr.msra.gmra.mrb[88].mxu1 %vm163_vm1, %v2775_v19  ;;  %v3153_v19 = vld [vmem:[#allocation2] ss:$0 sm:$0xff] }
0x202b   :  { %3562 = vmatprep.mubr.msk.bf16.mxu1 %vm3690_vm0, %v3689_v8  ;;  %3559 = vmatpush3.bf16.msra.mxu1 %v3598_v55 }
0x202c   :  { %3560 = vmatprep.subr.bf16.mxu1 %v3689_v8 }
0x202f   :  { %3561 = vmatpush3.bf16.msra.mxu1 %v3599_v56 }
0x20fd   :  { %v2831_v23 = vpop.f32.mrb[88].mxu1 }
0x20fe   :  { %v2832_v24 = vadd.f32 %v3139_v22, %v2831_v23  ;;  %v3544_v25 = vpop.f32.mrb[89].mxu1 }
0x20ff   :  { %v2834_v26 = vpop.f32.mrb[90].mxu1 }
0x2100   :  { %v2840_v29 = vmul.f32 0.70710677, %v2832_v24  ;;  %v2835_v30 = vadd.f32 %v3139_v22, %v2834_v26  ;;  %v3545_v0 = vpop.f32.mrb[91].mxu1  ;;  %v2838_v34 = vmul.f32 0.5, %v2832_v24 }
0x2102   :  { %3680 = verf.f32 %v2840_v29  ;;  %v2841_v31 = vmul.f32 0.70710677, %v2835_v30  ;;  %v2839_v36 = vmul.f32 0.5, %v2835_v30 }
0x2104   :  { %3682 = verf.f32 %v2841_v31 }
0x210c   :  { %v3681_v32 = vpop.eup %3680 }
0x210d   :  { %v2844_v45 = vadd.f32 1.0, %v3681_v32 }
0x210e   :  { %v3683_v33 = vpop.eup %3682 }
0x210f   :  { %v2845_v37 = vadd.f32 1.0, %v3683_v33  ;;  %v2846_v27 = vmul.f32 %v2844_v45, %v2838_v34 }
0x2111   :  { %v2847_v28 = vmul.f32 %v2845_v37, %v2839_v36 }
0x2113   :  { %v2848_v39 = vpack.c.bf16 %v2847_v28, %v2846_v27 }
0x2115   :  { %3555 = vmatmul.mubr.msk.bf16.vlgmr.msra.gmra.mrb[88].mxu0 %vm1451_vm4, %v2848_v39 }
0x21e8   :  { %v2916_v41 = vpop.f32.mrb[88].mxu0 }
0x21e9   :  { %v2917_v42 = vadd.f32 %v3143_v40, %v2916_v41  ;;  %v3556_v43 = vpop.f32.mrb[89].mxu0 }
0x21ea   :  { %v2919_v47 = vpop.f32.mrb[90].mxu0 }
0x21eb   :  { %v2920_v48 = vadd.f32 %v3143_v40, %v2919_v47  ;;  %v3557_v50 = vpop.f32.mrb[91].mxu0  ;;  %v2923_v51 = vadd.f32 %v2917_v42, %v2773_v17 }
0x21ed   :  { %v2929_v46 = vsel %vm163_vm1, %v2923_v51, 0.0  ;;  %v2924_v52 = vadd.f32 %v2920_v48, %v2774_v18 }
0x21ee   :  { %2930 = vadd.xlane.f32.xlu1 %v2929_v46 }
0x21ef   :  { %v2932_v53 = vsel %vm163_vm1, %v2924_v52, 0.0 }
0x21f0   :  { %2933 = vadd.xlane.f32.xlu0 %v2932_v53 }
0x227b   :  { %v2931_v54 = vpop.xlane.xlu1 %2930 }
0x227c   :  { %v2935_v44 = vmul.f32 0.03125, %v2931_v54 }
0x227d   :  { %v2934_v57 = vpop.xlane.xlu0 %2933 }
0x227e   :  { %v2937_v49 = vsub.f32 %v2923_v51, %v2935_v44  ;;  %v2936_v58 = vmul.f32 0.03125, %v2934_v57 }
0x2280   :  { %v2938_v59 = vsub.f32 %v2924_v52, %v2936_v58  ;;  %v2939_v35 = vmul.f32 %v2937_v49, %v2937_v49 }
0x2282   :  { %v2941_v60 = vsel %vm163_vm1, %v2939_v35, 0.0  ;;  %v2940_v62 = vmul.f32 %v2938_v59, %v2938_v59 }
0x2283   :  { %2942 = vadd.xlane.f32.xlu1 %v2941_v60 }
0x2284   :  { %v2944_v63 = vsel %vm163_vm1, %v2940_v62, 0.0 }
0x2285   :  { %2945 = vadd.xlane.f32.xlu0 %v2944_v63 }
0x2310   :  { %v2943_v2 = vpop.xlane.xlu1 %2942 }
0x2311   :  { %v2947_v3 = vmul.f32 0.03125, %v2943_v2 }
0x2312   :  { %v2946_v38 = vpop.xlane.xlu0 %2945 }
0x2313   :  { %v2949_v4 = vadd.f32 1e-05, %v2947_v3  ;;  %v2948_v7 = vmul.f32 0.03125, %v2946_v38 }
0x2315   :  { %3684 = vrsqrt.f32 %v2949_v4  ;;  %v2950_v9 = vadd.f32 1e-05, %v2948_v7 }
0x2317   :  { %3686 = vrsqrt.f32 %v2950_v9 }
0x231f   :  { %v3685_v11 = vpop.eup %3684 }
0x2320   :  { %v2953_v8 = vmul.f32 %v3685_v11, %v2937_v49 }
0x2321   :  { %v3687_v6 = vpop.eup %3686 }
0x2322   :  { %v2961_v13 = vmul.f32 %v3151_v12, %v2953_v8  ;;  %v2954_v14 = vmul.f32 %v3687_v6, %v2938_v59 }
0x2324   :  { %v2962_v16 = vmul.f32 %v3151_v12, %v2954_v14  ;;  %v2969_v5 = vadd.f32 %v3152_v15, %v2961_v13 }
0x2326   :  { %v2970_v17 = vadd.f32 %v3152_v15, %v2962_v16 }
0x2328   :  { %v2971_v18 = vpack.c.bf16 %v2970_v17, %v2969_v5 }
0x232a   :  { %3563 = vmatmul.mubr.msk.bf16.vlgmr.msra.gmra.mrb[92].mxu1 %vm163_vm1, %v2971_v18 }
0x23fd   :  { %v3032_v10 = vpop.f32.mrb[92].mxu1 }
0x23fe   :  { %v3033_v20 = vadd.f32 %v3153_v19, %v3032_v10  ;;  %v3564_v61 = vpop.f32.mrb[93].mxu1 }
0x23ff   :  { %v3035_v21 = vpop.f32.mrb[94].mxu1 }
0x2400   :  { %3040 = vst.msk [vmem:[%s4418_s19] sm:$0xff] %vm3039_vm5, %v3033_v20  ;;  %v3036_v22 = vadd.f32 %v3153_v19, %v3035_v21  ;;  %v3565_v23 = vpop.f32.mrb[95].mxu1 }
0x2402   :  { %3041 = vst.msk [vmem:[%s4418_s19 + $0x8] sm:$0xff] %vm3039_vm5, %v3036_v22 }

</bundles_post_ra>
